<compile_context>
chip_gen: v5e
topology: v5e:2x2
jax: 0.10.0
libtpu: 0.0.40
codegen_flags: <defaults>
</compile_context>

<pallas_src>
import functools

import jax
import jax.numpy as jnp
from jax.experimental import pallas as pl
from jax.experimental.pallas import tpu as pltpu

_SMOOTH = 1e-6


def _shift_axis(x, d, axis, align):
    """out[..., i, ...] = x[..., i + d, ...] along `axis`; zero outside bounds."""
    if d == 0:
        return x
    n = x.shape[axis]
    if n % align == 0:
        rolled = pltpu.roll(x, (-d) % n, axis)          # jnp.roll semantics
        ids = jax.lax.broadcasted_iota(jnp.int32, x.shape, axis)
        if d > 0:
            return jnp.where(ids < n - 1, rolled, 0.0)
        return jnp.where(ids >= 1, rolled, 0.0)
    # Fallback for sublane/lane-unaligned dims: static slice + zero strip.
    zshape = list(x.shape)
    zshape[axis] = 1
    zeros = jnp.zeros(zshape, x.dtype)
    if d > 0:
        return jnp.concatenate(
            [jax.lax.slice_in_dim(x, 1, n, axis=axis), zeros], axis=axis)
    return jnp.concatenate(
        [zeros, jax.lax.slice_in_dim(x, 0, n - 1, axis=axis)], axis=axis)


def _shift2d(img, dy, dx):
    """out[h, w] = img[h + dy, w + dx], zero padded (Conv2d padding=1 taps)."""
    img = _shift_axis(img, dy, axis=0, align=8)      # sublane shift
    img = _shift_axis(img, dx, axis=1, align=128)    # lane shift
    return img


def _sobel_grad_mag(img):
    """sqrt(conv_x(img)^2 + conv_y(img)^2 + smooth); 3x3 Sobel, stride 1, pad 1."""
    # Shared horizontal taps (separable Sobel).
    wl = _shift2d(img, 0, -1)          # img[h, w-1]
    wr = _shift2d(img, 0, +1)          # img[h, w+1]
    hdiff = wl - wr                    # horizontal [1, 0, -1] pass (Sobel-X)
    hsm = wl + 2.0 * img + wr          # horizontal [1, 2, 1] pass  (Sobel-Y)
    gx = _shift2d(hdiff, -1, 0) + 2.0 * hdiff + _shift2d(hdiff, +1, 0)
    gy = _shift2d(hsm, -1, 0) - _shift2d(hsm, +1, 0)
    return jnp.sqrt(gx * gx + gy * gy + _SMOOTH)


def _combined_loss_kernel(result_ref, label_ref,
                          dice_lab_ref, dice_ref, dt_ref, total_ref,
                          psum_acc, lsum_acc, isum_acc, bnd_acc,
                          *, alpha, n, c, h, w):
    b = pl.program_id(0)

    @pl.when(b == 0)
    def _init():
        psum_acc[...] = jnp.zeros_like(psum_acc)
        lsum_acc[...] = jnp.zeros_like(lsum_acc)
        isum_acc[...] = jnp.zeros_like(isum_acc)
        bnd_acc[...] = jnp.zeros_like(bnd_acc)

    # ---- channel softmax for this sample (f32 math, bf16-friendly inputs) ----
    xs = [result_ref[0, j].astype(jnp.float32) for j in range(c)]
    m = xs[0]
    for j in range(1, c):
        m = jnp.maximum(m, xs[j])
    es = [jnp.exp(x - m) for x in xs]
    denom = es[0]
    for j in range(1, c):
        denom = denom + es[j]
    inv = 1.0 / denom                  # one reciprocal per sample; C VALU muls below

    # ---- fused dice partial sums + boundary squared error (per class) ----
    for j in range(c):
        prob = es[j] * inv
        lab = label_ref[0, j].astype(jnp.float32)
        psum_acc[j] = psum_acc[j] + prob
        lsum_acc[j] = lsum_acc[j] + lab
        isum_acc[j] = isum_acc[j] + prob * lab
        if j >= 1:                     # BoundaryLoss skips class 0
            diff = _sobel_grad_mag(lab) - _sobel_grad_mag(prob)
            bnd_acc[...] = bnd_acc[...] + diff * diff

    # ---- finalize on the last sample: one cross-lane reduce per quantity ----
    @pl.when(b == n - 1)
    def _finalize():
        total_dice = 0.0
        for j in range(c):
            ps = jnp.sum(psum_acc[j])
            ls = jnp.sum(lsum_acc[j])
            inter = jnp.sum(isum_acc[j])
            dice = (2.0 * inter + _SMOOTH) / (ps + ls + inter + _SMOOTH)
            dl = 1.0 - dice
            dice_lab_ref[j] = dl
            total_dice = total_dice + dl
        total_dice = total_dice / float(c)
        # MSELoss(reduction='mean') over (N,1,H,W) per class, summed over classes 1..C-1.
        boundary = jnp.sum(bnd_acc[...]) / float(n * h * w)
        # TODO(synk): original module calls undefined self.dt_loss_fun; it is
        # interpreted here as dt_loss == boundary_loss.
        dice_ref[0] = total_dice
        dt_ref[0] = boundary
        total_ref[0] = (1.0 - alpha) * total_dice + alpha * boundary


def combined_loss(result, label, alpha):
    """Returns (total_loss, dice_loss_labels[C], dice_loss, dt_loss), as in the torch module."""
    n, c, h, w = result.shape
    assert label.shape == (n, c, h, w)

    kernel = functools.partial(_combined_loss_kernel,
                               alpha=float(alpha), n=n, c=c, h=h, w=w)

    # VMEM budget: double-buffered per-sample input blocks + accumulators + temps.
    # TODO(synk): for very large H*W on v7x (64 MiB VMEM), tile H into row bands
    # with a 1-row halo for the Sobel pass.
    in_bytes = c * h * w * (result.dtype.itemsize + label.dtype.itemsize)
    scratch_bytes = (3 * c + 1) * h * w * 4
    temps_bytes = (2 * c + 8) * h * w * 4
    vmem_limit = int(min(max(2 * in_bytes + scratch_bytes + temps_bytes + (4 << 20),
                             16 << 20), 64 << 20))

    sample_spec = pl.BlockSpec((1, c, h, w), lambda b: (b, 0, 0, 0))
    smem_spec = pl.BlockSpec(memory_space=pltpu.MemorySpace.SMEM)

    dice_labels, dice_loss, dt_loss, total_loss = pl.pallas_call(
        kernel,
        grid=(n,),
        out_shape=(
            jax.ShapeDtypeStruct((c,), jnp.float32),   # per-class dice loss
            jax.ShapeDtypeStruct((1,), jnp.float32),   # mean dice loss
            jax.ShapeDtypeStruct((1,), jnp.float32),   # dt / boundary loss
            jax.ShapeDtypeStruct((1,), jnp.float32),   # total loss
        ),
        in_specs=[sample_spec, sample_spec],
        out_specs=(smem_spec, smem_spec, smem_spec, smem_spec),
        scratch_shapes=[
            pltpu.VMEM((c, h, w), jnp.float32),   # per-class sum(prob)
            pltpu.VMEM((c, h, w), jnp.float32),   # per-class sum(label)
            pltpu.VMEM((c, h, w), jnp.float32),   # per-class sum(prob*label)
            pltpu.VMEM((h, w), jnp.float32),      # boundary squared-error
        ],
        compiler_params=pltpu.CompilerParams(
            dimension_semantics=("arbitrary",),
            vmem_limit_bytes=vmem_limit,
        ),
    )(result, label)
    return total_loss[0], dice_labels, dice_loss[0], dt_loss[0]


if __name__ == "__main__":
    key = jax.random.PRNGKey(0)
    k1, k2 = jax.random.split(key)
    N, C, H, W = 2, 4, 16, 128   # W = 128 keeps the lane dimension dense

    # logits (pre-softmax network output) and one-hot labels, NCHW, bf16 inputs
    result = jax.random.normal(k1, (N, C, H, W), dtype=jnp.float32).astype(jnp.bfloat16)
    cls = jax.random.randint(k2, (N, H, W), 0, C)
    label = jnp.transpose(jax.nn.one_hot(cls, C, dtype=jnp.bfloat16), (0, 3, 1, 2))

    total, dice_labels, dice, dt = combined_loss(result, label, alpha=0.5)
    jax.block_until_ready((total, dice_labels, dice, dt))
    print("KERNEL_OK")
</pallas_src>

<mosaic_0001>
module attributes {stable_mosaic.version = 11 : i64} {
  func.func @_combined_loss_kernel(%arg0: i32, %arg1: memref<1x4x16x128xbf16, #tpu.memory_space<vmem>>, %arg2: memref<1x4x16x128xbf16, #tpu.memory_space<vmem>>, %arg3: memref<4xf32, #tpu.memory_space<smem>>, %arg4: memref<1xf32, #tpu.memory_space<smem>>, %arg5: memref<1xf32, #tpu.memory_space<smem>>, %arg6: memref<1xf32, #tpu.memory_space<smem>>, %arg7: memref<4x16x128xf32, #tpu.memory_space<vmem>>, %arg8: memref<4x16x128xf32, #tpu.memory_space<vmem>>, %arg9: memref<4x16x128xf32, #tpu.memory_space<vmem>>, %arg10: memref<16x128xf32, #tpu.memory_space<vmem>>) attributes {dimension_semantics = [#tpu.dimension_semantics<arbitrary>], iteration_bounds = array<i64: 2>, scalar_prefetch = 0 : i64, scratch_operands = 4 : i64, tpu.core_type = #tpu.core_type<tc>, window_params = [{transform_indices = @transform_0, window_bounds = array<i64: 1, 4, 16, 128>}, {transform_indices = @transform_1, window_bounds = array<i64: 1, 4, 16, 128>}, {transform_indices = @transform_2, window_bounds = array<i64: 4>}, {transform_indices = @transform_3, window_bounds = array<i64: 1>}, {transform_indices = @transform_4, window_bounds = array<i64: 1>}, {transform_indices = @transform_5, window_bounds = array<i64: 1>}]} {
    %c0_i32 = arith.constant 0 : i32
    %0 = arith.cmpi eq, %arg0, %c0_i32 : i32
    %1 = arith.extui %0 : i1 to i32
    %c0_i32_0 = arith.constant 0 : i32
    %2 = arith.cmpi ne, %1, %c0_i32_0 : i32
    scf.if %2 {
      %cst_238 = arith.constant 0.000000e+00 : f32
      %453 = vector.broadcast %cst_238 : f32 to vector<4x16x128xf32>
      %c0_239 = arith.constant 0 : index
      %c0_240 = arith.constant 0 : index
      %c0_241 = arith.constant 0 : index
      %454 = vector.load %arg7[%c0_239, %c0_240, %c0_241] : memref<4x16x128xf32, #tpu.memory_space<vmem>>, vector<4x16x128xf32>
      tpu.vector_store %arg7[%c0_239, %c0_240, %c0_241], %453 {strides = array<i32>} : memref<4x16x128xf32, #tpu.memory_space<vmem>>, vector<4x16x128xf32>,
      %cst_242 = arith.constant 0.000000e+00 : f32
      %455 = vector.broadcast %cst_242 : f32 to vector<4x16x128xf32>
      %c0_243 = arith.constant 0 : index
      %c0_244 = arith.constant 0 : index
      %c0_245 = arith.constant 0 : index
      %456 = vector.load %arg8[%c0_243, %c0_244, %c0_245] : memref<4x16x128xf32, #tpu.memory_space<vmem>>, vector<4x16x128xf32>
      tpu.vector_store %arg8[%c0_243, %c0_244, %c0_245], %455 {strides = array<i32>} : memref<4x16x128xf32, #tpu.memory_space<vmem>>, vector<4x16x128xf32>,
      %cst_246 = arith.constant 0.000000e+00 : f32
      %457 = vector.broadcast %cst_246 : f32 to vector<4x16x128xf32>
      %c0_247 = arith.constant 0 : index
      %c0_248 = arith.constant 0 : index
      %c0_249 = arith.constant 0 : index
      %458 = vector.load %arg9[%c0_247, %c0_248, %c0_249] : memref<4x16x128xf32, #tpu.memory_space<vmem>>, vector<4x16x128xf32>
      tpu.vector_store %arg9[%c0_247, %c0_248, %c0_249], %457 {strides = array<i32>} : memref<4x16x128xf32, #tpu.memory_space<vmem>>, vector<4x16x128xf32>,
      %cst_250 = arith.constant 0.000000e+00 : f32
      %459 = vector.broadcast %cst_250 : f32 to vector<16x128xf32>
      %c0_251 = arith.constant 0 : index
      %c0_252 = arith.constant 0 : index
      %460 = vector.load %arg10[%c0_251, %c0_252] : memref<16x128xf32, #tpu.memory_space<vmem>>, vector<16x128xf32>
      tpu.vector_store %arg10[%c0_251, %c0_252], %459 {strides = array<i32>} : memref<16x128xf32, #tpu.memory_space<vmem>>, vector<16x128xf32>,
    } else {
    }
    %c0 = arith.constant 0 : index
    %c0_1 = arith.constant 0 : index
    %c0_2 = arith.constant 0 : index
    %c0_3 = arith.constant 0 : index
    %3 = vector.load %arg1[%c0, %c0_1, %c0_2, %c0_3] : memref<1x4x16x128xbf16, #tpu.memory_space<vmem>>, vector<1x1x16x128xbf16>
    %4 = vector.shape_cast %3 : vector<1x1x16x128xbf16> to vector<16x128xbf16>
    %5 = arith.extf %4 : vector<16x128xbf16> to vector<16x128xf32>
    %c0_4 = arith.constant 0 : index
    %c1 = arith.constant 1 : index
    %c0_5 = arith.constant 0 : index
    %c0_6 = arith.constant 0 : index
    %6 = vector.load %arg1[%c0_4, %c1, %c0_5, %c0_6] : memref<1x4x16x128xbf16, #tpu.memory_space<vmem>>, vector<1x1x16x128xbf16>
    %7 = vector.shape_cast %6 : vector<1x1x16x128xbf16> to vector<16x128xbf16>
    %8 = arith.extf %7 : vector<16x128xbf16> to vector<16x128xf32>
    %c0_7 = arith.constant 0 : index
    %c2 = arith.constant 2 : index
    %c0_8 = arith.constant 0 : index
    %c0_9 = arith.constant 0 : index
    %9 = vector.load %arg1[%c0_7, %c2, %c0_8, %c0_9] : memref<1x4x16x128xbf16, #tpu.memory_space<vmem>>, vector<1x1x16x128xbf16>
    %10 = vector.shape_cast %9 : vector<1x1x16x128xbf16> to vector<16x128xbf16>
    %11 = arith.extf %10 : vector<16x128xbf16> to vector<16x128xf32>
    %c0_10 = arith.constant 0 : index
    %c3 = arith.constant 3 : index
    %c0_11 = arith.constant 0 : index
    %c0_12 = arith.constant 0 : index
    %12 = vector.load %arg1[%c0_10, %c3, %c0_11, %c0_12] : memref<1x4x16x128xbf16, #tpu.memory_space<vmem>>, vector<1x1x16x128xbf16>
    %13 = vector.shape_cast %12 : vector<1x1x16x128xbf16> to vector<16x128xbf16>
    %14 = arith.extf %13 : vector<16x128xbf16> to vector<16x128xf32>
    %15 = arith.maximumf %5, %8 : vector<16x128xf32>
    %16 = arith.maximumf %15, %11 : vector<16x128xf32>
    %17 = arith.maximumf %16, %14 : vector<16x128xf32>
    %18 = arith.subf %5, %17 : vector<16x128xf32>
    %19 = math.exp %18 : vector<16x128xf32>
    %20 = arith.subf %8, %17 : vector<16x128xf32>
    %21 = math.exp %20 : vector<16x128xf32>
    %22 = arith.subf %11, %17 : vector<16x128xf32>
    %23 = math.exp %22 : vector<16x128xf32>
    %24 = arith.subf %14, %17 : vector<16x128xf32>
    %25 = math.exp %24 : vector<16x128xf32>
    %26 = arith.addf %19, %21 : vector<16x128xf32>
    %27 = arith.addf %26, %23 : vector<16x128xf32>
    %28 = arith.addf %27, %25 : vector<16x128xf32>
    %cst = arith.constant 1.000000e+00 : f32
    %29 = vector.broadcast %cst : f32 to vector<16x128xf32>
    %30 = arith.divf %29, %28 : vector<16x128xf32>
    %31 = arith.mulf %19, %30 : vector<16x128xf32>
    %c0_13 = arith.constant 0 : index
    %c0_14 = arith.constant 0 : index
    %c0_15 = arith.constant 0 : index
    %c0_16 = arith.constant 0 : index
    %32 = vector.load %arg2[%c0_13, %c0_14, %c0_15, %c0_16] : memref<1x4x16x128xbf16, #tpu.memory_space<vmem>>, vector<1x1x16x128xbf16>
    %33 = vector.shape_cast %32 : vector<1x1x16x128xbf16> to vector<16x128xbf16>
    %34 = arith.extf %33 : vector<16x128xbf16> to vector<16x128xf32>
    %c0_17 = arith.constant 0 : index
    %c0_18 = arith.constant 0 : index
    %c0_19 = arith.constant 0 : index
    %35 = vector.load %arg7[%c0_17, %c0_18, %c0_19] : memref<4x16x128xf32, #tpu.memory_space<vmem>>, vector<1x16x128xf32>
    %36 = vector.shape_cast %35 : vector<1x16x128xf32> to vector<16x128xf32>
    %37 = arith.addf %36, %31 : vector<16x128xf32>
    %c0_20 = arith.constant 0 : index
    %c0_21 = arith.constant 0 : index
    %c0_22 = arith.constant 0 : index
    %38 = vector.load %arg7[%c0_20, %c0_21, %c0_22] : memref<4x16x128xf32, #tpu.memory_space<vmem>>, vector<1x16x128xf32>
    %39 = vector.shape_cast %38 : vector<1x16x128xf32> to vector<16x128xf32>
    %40 = vector.shape_cast %37 : vector<16x128xf32> to vector<1x16x128xf32>
    tpu.vector_store %arg7[%c0_20, %c0_21, %c0_22], %40 {strides = array<i32>} : memref<4x16x128xf32, #tpu.memory_space<vmem>>, vector<1x16x128xf32>,
    %c0_23 = arith.constant 0 : index
    %c0_24 = arith.constant 0 : index
    %c0_25 = arith.constant 0 : index
    %41 = vector.load %arg8[%c0_23, %c0_24, %c0_25] : memref<4x16x128xf32, #tpu.memory_space<vmem>>, vector<1x16x128xf32>
    %42 = vector.shape_cast %41 : vector<1x16x128xf32> to vector<16x128xf32>
    %43 = arith.addf %42, %34 : vector<16x128xf32>
    %c0_26 = arith.constant 0 : index
    %c0_27 = arith.constant 0 : index
    %c0_28 = arith.constant 0 : index
    %44 = vector.load %arg8[%c0_26, %c0_27, %c0_28] : memref<4x16x128xf32, #tpu.memory_space<vmem>>, vector<1x16x128xf32>
    %45 = vector.shape_cast %44 : vector<1x16x128xf32> to vector<16x128xf32>
    %46 = vector.shape_cast %43 : vector<16x128xf32> to vector<1x16x128xf32>
    tpu.vector_store %arg8[%c0_26, %c0_27, %c0_28], %46 {strides = array<i32>} : memref<4x16x128xf32, #tpu.memory_space<vmem>>, vector<1x16x128xf32>,
    %c0_29 = arith.constant 0 : index
    %c0_30 = arith.constant 0 : index
    %c0_31 = arith.constant 0 : index
    %47 = vector.load %arg9[%c0_29, %c0_30, %c0_31] : memref<4x16x128xf32, #tpu.memory_space<vmem>>, vector<1x16x128xf32>
    %48 = vector.shape_cast %47 : vector<1x16x128xf32> to vector<16x128xf32>
    %49 = arith.mulf %31, %34 : vector<16x128xf32>
    %50 = arith.addf %48, %49 : vector<16x128xf32>
    %c0_32 = arith.constant 0 : index
    %c0_33 = arith.constant 0 : index
    %c0_34 = arith.constant 0 : index
    %51 = vector.load %arg9[%c0_32, %c0_33, %c0_34] : memref<4x16x128xf32, #tpu.memory_space<vmem>>, vector<1x16x128xf32>
    %52 = vector.shape_cast %51 : vector<1x16x128xf32> to vector<16x128xf32>
    %53 = vector.shape_cast %50 : vector<16x128xf32> to vector<1x16x128xf32>
    tpu.vector_store %arg9[%c0_32, %c0_33, %c0_34], %53 {strides = array<i32>} : memref<4x16x128xf32, #tpu.memory_space<vmem>>, vector<1x16x128xf32>,
    %54 = arith.mulf %21, %30 : vector<16x128xf32>
    %c0_35 = arith.constant 0 : index
    %c1_36 = arith.constant 1 : index
    %c0_37 = arith.constant 0 : index
    %c0_38 = arith.constant 0 : index
    %55 = vector.load %arg2[%c0_35, %c1_36, %c0_37, %c0_38] : memref<1x4x16x128xbf16, #tpu.memory_space<vmem>>, vector<1x1x16x128xbf16>
    %56 = vector.shape_cast %55 : vector<1x1x16x128xbf16> to vector<16x128xbf16>
    %57 = arith.extf %56 : vector<16x128xbf16> to vector<16x128xf32>
    %c1_39 = arith.constant 1 : index
    %c0_40 = arith.constant 0 : index
    %c0_41 = arith.constant 0 : index
    %58 = vector.load %arg7[%c1_39, %c0_40, %c0_41] : memref<4x16x128xf32, #tpu.memory_space<vmem>>, vector<1x16x128xf32>
    %59 = vector.shape_cast %58 : vector<1x16x128xf32> to vector<16x128xf32>
    %60 = arith.addf %59, %54 : vector<16x128xf32>
    %c1_42 = arith.constant 1 : index
    %c0_43 = arith.constant 0 : index
    %c0_44 = arith.constant 0 : index
    %61 = vector.load %arg7[%c1_42, %c0_43, %c0_44] : memref<4x16x128xf32, #tpu.memory_space<vmem>>, vector<1x16x128xf32>
    %62 = vector.shape_cast %61 : vector<1x16x128xf32> to vector<16x128xf32>
    %63 = vector.shape_cast %60 : vector<16x128xf32> to vector<1x16x128xf32>
    tpu.vector_store %arg7[%c1_42, %c0_43, %c0_44], %63 {strides = array<i32>} : memref<4x16x128xf32, #tpu.memory_space<vmem>>, vector<1x16x128xf32>,
    %c1_45 = arith.constant 1 : index
    %c0_46 = arith.constant 0 : index
    %c0_47 = arith.constant 0 : index
    %64 = vector.load %arg8[%c1_45, %c0_46, %c0_47] : memref<4x16x128xf32, #tpu.memory_space<vmem>>, vector<1x16x128xf32>
    %65 = vector.shape_cast %64 : vector<1x16x128xf32> to vector<16x128xf32>
    %66 = arith.addf %65, %57 : vector<16x128xf32>
    %c1_48 = arith.constant 1 : index
    %c0_49 = arith.constant 0 : index
    %c0_50 = arith.constant 0 : index
    %67 = vector.load %arg8[%c1_48, %c0_49, %c0_50] : memref<4x16x128xf32, #tpu.memory_space<vmem>>, vector<1x16x128xf32>
    %68 = vector.shape_cast %67 : vector<1x16x128xf32> to vector<16x128xf32>
    %69 = vector.shape_cast %66 : vector<16x128xf32> to vector<1x16x128xf32>
    tpu.vector_store %arg8[%c1_48, %c0_49, %c0_50], %69 {strides = array<i32>} : memref<4x16x128xf32, #tpu.memory_space<vmem>>, vector<1x16x128xf32>,
    %c1_51 = arith.constant 1 : index
    %c0_52 = arith.constant 0 : index
    %c0_53 = arith.constant 0 : index
    %70 = vector.load %arg9[%c1_51, %c0_52, %c0_53] : memref<4x16x128xf32, #tpu.memory_space<vmem>>, vector<1x16x128xf32>
    %71 = vector.shape_cast %70 : vector<1x16x128xf32> to vector<16x128xf32>
    %72 = arith.mulf %54, %57 : vector<16x128xf32>
    %73 = arith.addf %71, %72 : vector<16x128xf32>
    %c1_54 = arith.constant 1 : index
    %c0_55 = arith.constant 0 : index
    %c0_56 = arith.constant 0 : index
    %74 = vector.load %arg9[%c1_54, %c0_55, %c0_56] : memref<4x16x128xf32, #tpu.memory_space<vmem>>, vector<1x16x128xf32>
    %75 = vector.shape_cast %74 : vector<1x16x128xf32> to vector<16x128xf32>
    %76 = vector.shape_cast %73 : vector<16x128xf32> to vector<1x16x128xf32>
    tpu.vector_store %arg9[%c1_54, %c0_55, %c0_56], %76 {strides = array<i32>} : memref<4x16x128xf32, #tpu.memory_space<vmem>>, vector<1x16x128xf32>,
    %c1_i32 = arith.constant 1 : i32
    %77 = tpu.dynamic_rotate %57 by %c1_i32 dim 1 : vector<16x128xf32>, i32 -> vector<16x128xf32>
    %78 = tpu.iota {dimensions = array<i32: 1>} : vector<16x128xi32>
    %c1_i32_57 = arith.constant 1 : i32
    %79 = vector.broadcast %c1_i32_57 : i32 to vector<16x128xi32>
    %80 = arith.cmpi sge, %78, %79 : vector<16x128xi32>
    %cst_58 = arith.constant 0.000000e+00 : f32
    %81 = vector.broadcast %cst_58 : f32 to vector<16x128xf32>
    %82 = arith.select %80, %77, %81 : vector<16x128xi1>, vector<16x128xf32>
    %c127_i32 = arith.constant 127 : i32
    %83 = tpu.dynamic_rotate %57 by %c127_i32 dim 1 : vector<16x128xf32>, i32 -> vector<16x128xf32>
    %84 = tpu.iota {dimensions = array<i32: 1>} : vector<16x128xi32>
    %c127_i32_59 = arith.constant 127 : i32
    %85 = vector.broadcast %c127_i32_59 : i32 to vector<16x128xi32>
    %86 = arith.cmpi slt, %84, %85 : vector<16x128xi32>
    %cst_60 = arith.constant 0.000000e+00 : f32
    %87 = vector.broadcast %cst_60 : f32 to vector<16x128xf32>
    %88 = arith.select %86, %83, %87 : vector<16x128xi1>, vector<16x128xf32>
    %89 = arith.subf %82, %88 : vector<16x128xf32>
    %cst_61 = arith.constant 2.000000e+00 : f32
    %90 = vector.broadcast %cst_61 : f32 to vector<16x128xf32>
    %91 = arith.mulf %90, %57 : vector<16x128xf32>
    %92 = arith.addf %82, %91 : vector<16x128xf32>
    %93 = arith.addf %92, %88 : vector<16x128xf32>
    %c1_i32_62 = arith.constant 1 : i32
    %94 = tpu.dynamic_rotate %89 by %c1_i32_62 dim 0 : vector<16x128xf32>, i32 -> vector<16x128xf32>
    %95 = tpu.iota {dimensions = array<i32: 0>} : vector<16x128xi32>
    %c1_i32_63 = arith.constant 1 : i32
    %96 = vector.broadcast %c1_i32_63 : i32 to vector<16x128xi32>
    %97 = arith.cmpi sge, %95, %96 : vector<16x128xi32>
    %cst_64 = arith.constant 0.000000e+00 : f32
    %98 = vector.broadcast %cst_64 : f32 to vector<16x128xf32>
    %99 = arith.select %97, %94, %98 : vector<16x128xi1>, vector<16x128xf32>
    %cst_65 = arith.constant 2.000000e+00 : f32
    %100 = vector.broadcast %cst_65 : f32 to vector<16x128xf32>
    %101 = arith.mulf %100, %89 : vector<16x128xf32>
    %102 = arith.addf %99, %101 : vector<16x128xf32>
    %c15_i32 = arith.constant 15 : i32
    %103 = tpu.dynamic_rotate %89 by %c15_i32 dim 0 : vector<16x128xf32>, i32 -> vector<16x128xf32>
    %104 = tpu.iota {dimensions = array<i32: 0>} : vector<16x128xi32>
    %c15_i32_66 = arith.constant 15 : i32
    %105 = vector.broadcast %c15_i32_66 : i32 to vector<16x128xi32>
    %106 = arith.cmpi slt, %104, %105 : vector<16x128xi32>
    %cst_67 = arith.constant 0.000000e+00 : f32
    %107 = vector.broadcast %cst_67 : f32 to vector<16x128xf32>
    %108 = arith.select %106, %103, %107 : vector<16x128xi1>, vector<16x128xf32>
    %109 = arith.addf %102, %108 : vector<16x128xf32>
    %c1_i32_68 = arith.constant 1 : i32
    %110 = tpu.dynamic_rotate %93 by %c1_i32_68 dim 0 : vector<16x128xf32>, i32 -> vector<16x128xf32>
    %111 = tpu.iota {dimensions = array<i32: 0>} : vector<16x128xi32>
    %c1_i32_69 = arith.constant 1 : i32
    %112 = vector.broadcast %c1_i32_69 : i32 to vector<16x128xi32>
    %113 = arith.cmpi sge, %111, %112 : vector<16x128xi32>
    %cst_70 = arith.constant 0.000000e+00 : f32
    %114 = vector.broadcast %cst_70 : f32 to vector<16x128xf32>
    %115 = arith.select %113, %110, %114 : vector<16x128xi1>, vector<16x128xf32>
    %c15_i32_71 = arith.constant 15 : i32
    %116 = tpu.dynamic_rotate %93 by %c15_i32_71 dim 0 : vector<16x128xf32>, i32 -> vector<16x128xf32>
    %117 = tpu.iota {dimensions = array<i32: 0>} : vector<16x128xi32>
    %c15_i32_72 = arith.constant 15 : i32
    %118 = vector.broadcast %c15_i32_72 : i32 to vector<16x128xi32>
    %119 = arith.cmpi slt, %117, %118 : vector<16x128xi32>
    %cst_73 = arith.constant 0.000000e+00 : f32
    %120 = vector.broadcast %cst_73 : f32 to vector<16x128xf32>
    %121 = arith.select %119, %116, %120 : vector<16x128xi1>, vector<16x128xf32>
    %122 = arith.subf %115, %121 : vector<16x128xf32>
    %123 = arith.mulf %109, %109 : vector<16x128xf32>
    %124 = arith.mulf %122, %122 : vector<16x128xf32>
    %125 = arith.addf %123, %124 : vector<16x128xf32>
    %cst_74 = arith.constant 9.99999997E-7 : f32
    %126 = vector.broadcast %cst_74 : f32 to vector<16x128xf32>
    %127 = arith.addf %125, %126 : vector<16x128xf32>
    %128 = math.sqrt %127 : vector<16x128xf32>
    %c1_i32_75 = arith.constant 1 : i32
    %129 = tpu.dynamic_rotate %54 by %c1_i32_75 dim 1 : vector<16x128xf32>, i32 -> vector<16x128xf32>
    %130 = tpu.iota {dimensions = array<i32: 1>} : vector<16x128xi32>
    %c1_i32_76 = arith.constant 1 : i32
    %131 = vector.broadcast %c1_i32_76 : i32 to vector<16x128xi32>
    %132 = arith.cmpi sge, %130, %131 : vector<16x128xi32>
    %cst_77 = arith.constant 0.000000e+00 : f32
    %133 = vector.broadcast %cst_77 : f32 to vector<16x128xf32>
    %134 = arith.select %132, %129, %133 : vector<16x128xi1>, vector<16x128xf32>
    %c127_i32_78 = arith.constant 127 : i32
    %135 = tpu.dynamic_rotate %54 by %c127_i32_78 dim 1 : vector<16x128xf32>, i32 -> vector<16x128xf32>
    %136 = tpu.iota {dimensions = array<i32: 1>} : vector<16x128xi32>
    %c127_i32_79 = arith.constant 127 : i32
    %137 = vector.broadcast %c127_i32_79 : i32 to vector<16x128xi32>
    %138 = arith.cmpi slt, %136, %137 : vector<16x128xi32>
    %cst_80 = arith.constant 0.000000e+00 : f32
    %139 = vector.broadcast %cst_80 : f32 to vector<16x128xf32>
    %140 = arith.select %138, %135, %139 : vector<16x128xi1>, vector<16x128xf32>
    %141 = arith.subf %134, %140 : vector<16x128xf32>
    %cst_81 = arith.constant 2.000000e+00 : f32
    %142 = vector.broadcast %cst_81 : f32 to vector<16x128xf32>
    %143 = arith.mulf %142, %54 : vector<16x128xf32>
    %144 = arith.addf %134, %143 : vector<16x128xf32>
    %145 = arith.addf %144, %140 : vector<16x128xf32>
    %c1_i32_82 = arith.constant 1 : i32
    %146 = tpu.dynamic_rotate %141 by %c1_i32_82 dim 0 : vector<16x128xf32>, i32 -> vector<16x128xf32>
    %147 = tpu.iota {dimensions = array<i32: 0>} : vector<16x128xi32>
    %c1_i32_83 = arith.constant 1 : i32
    %148 = vector.broadcast %c1_i32_83 : i32 to vector<16x128xi32>
    %149 = arith.cmpi sge, %147, %148 : vector<16x128xi32>
    %cst_84 = arith.constant 0.000000e+00 : f32
    %150 = vector.broadcast %cst_84 : f32 to vector<16x128xf32>
    %151 = arith.select %149, %146, %150 : vector<16x128xi1>, vector<16x128xf32>
    %cst_85 = arith.constant 2.000000e+00 : f32
    %152 = vector.broadcast %cst_85 : f32 to vector<16x128xf32>
    %153 = arith.mulf %152, %141 : vector<16x128xf32>
    %154 = arith.addf %151, %153 : vector<16x128xf32>
    %c15_i32_86 = arith.constant 15 : i32
    %155 = tpu.dynamic_rotate %141 by %c15_i32_86 dim 0 : vector<16x128xf32>, i32 -> vector<16x128xf32>
    %156 = tpu.iota {dimensions = array<i32: 0>} : vector<16x128xi32>
    %c15_i32_87 = arith.constant 15 : i32
    %157 = vector.broadcast %c15_i32_87 : i32 to vector<16x128xi32>
    %158 = arith.cmpi slt, %156, %157 : vector<16x128xi32>
    %cst_88 = arith.constant 0.000000e+00 : f32
    %159 = vector.broadcast %cst_88 : f32 to vector<16x128xf32>
    %160 = arith.select %158, %155, %159 : vector<16x128xi1>, vector<16x128xf32>
    %161 = arith.addf %154, %160 : vector<16x128xf32>
    %c1_i32_89 = arith.constant 1 : i32
    %162 = tpu.dynamic_rotate %145 by %c1_i32_89 dim 0 : vector<16x128xf32>, i32 -> vector<16x128xf32>
    %163 = tpu.iota {dimensions = array<i32: 0>} : vector<16x128xi32>
    %c1_i32_90 = arith.constant 1 : i32
    %164 = vector.broadcast %c1_i32_90 : i32 to vector<16x128xi32>
    %165 = arith.cmpi sge, %163, %164 : vector<16x128xi32>
    %cst_91 = arith.constant 0.000000e+00 : f32
    %166 = vector.broadcast %cst_91 : f32 to vector<16x128xf32>
    %167 = arith.select %165, %162, %166 : vector<16x128xi1>, vector<16x128xf32>
    %c15_i32_92 = arith.constant 15 : i32
    %168 = tpu.dynamic_rotate %145 by %c15_i32_92 dim 0 : vector<16x128xf32>, i32 -> vector<16x128xf32>
    %169 = tpu.iota {dimensions = array<i32: 0>} : vector<16x128xi32>
    %c15_i32_93 = arith.constant 15 : i32
    %170 = vector.broadcast %c15_i32_93 : i32 to vector<16x128xi32>
    %171 = arith.cmpi slt, %169, %170 : vector<16x128xi32>
    %cst_94 = arith.constant 0.000000e+00 : f32
    %172 = vector.broadcast %cst_94 : f32 to vector<16x128xf32>
    %173 = arith.select %171, %168, %172 : vector<16x128xi1>, vector<16x128xf32>
    %174 = arith.subf %167, %173 : vector<16x128xf32>
    %175 = arith.mulf %161, %161 : vector<16x128xf32>
    %176 = arith.mulf %174, %174 : vector<16x128xf32>
    %177 = arith.addf %175, %176 : vector<16x128xf32>
    %cst_95 = arith.constant 9.99999997E-7 : f32
    %178 = vector.broadcast %cst_95 : f32 to vector<16x128xf32>
    %179 = arith.addf %177, %178 : vector<16x128xf32>
    %180 = math.sqrt %179 : vector<16x128xf32>
    %181 = arith.subf %128, %180 : vector<16x128xf32>
    %c0_96 = arith.constant 0 : index
    %c0_97 = arith.constant 0 : index
    %182 = vector.load %arg10[%c0_96, %c0_97] : memref<16x128xf32, #tpu.memory_space<vmem>>, vector<16x128xf32>
    %183 = arith.mulf %181, %181 : vector<16x128xf32>
    %184 = arith.addf %182, %183 : vector<16x128xf32>
    %c0_98 = arith.constant 0 : index
    %c0_99 = arith.constant 0 : index
    %185 = vector.load %arg10[%c0_98, %c0_99] : memref<16x128xf32, #tpu.memory_space<vmem>>, vector<16x128xf32>
    tpu.vector_store %arg10[%c0_98, %c0_99], %184 {strides = array<i32>} : memref<16x128xf32, #tpu.memory_space<vmem>>, vector<16x128xf32>,
    %186 = arith.mulf %23, %30 : vector<16x128xf32>
    %c0_100 = arith.constant 0 : index
    %c2_101 = arith.constant 2 : index
    %c0_102 = arith.constant 0 : index
    %c0_103 = arith.constant 0 : index
    %187 = vector.load %arg2[%c0_100, %c2_101, %c0_102, %c0_103] : memref<1x4x16x128xbf16, #tpu.memory_space<vmem>>, vector<1x1x16x128xbf16>
    %188 = vector.shape_cast %187 : vector<1x1x16x128xbf16> to vector<16x128xbf16>
    %189 = arith.extf %188 : vector<16x128xbf16> to vector<16x128xf32>
    %c2_104 = arith.constant 2 : index
    %c0_105 = arith.constant 0 : index
    %c0_106 = arith.constant 0 : index
    %190 = vector.load %arg7[%c2_104, %c0_105, %c0_106] : memref<4x16x128xf32, #tpu.memory_space<vmem>>, vector<1x16x128xf32>
    %191 = vector.shape_cast %190 : vector<1x16x128xf32> to vector<16x128xf32>
    %192 = arith.addf %191, %186 : vector<16x128xf32>
    %c2_107 = arith.constant 2 : index
    %c0_108 = arith.constant 0 : index
    %c0_109 = arith.constant 0 : index
    %193 = vector.load %arg7[%c2_107, %c0_108, %c0_109] : memref<4x16x128xf32, #tpu.memory_space<vmem>>, vector<1x16x128xf32>
    %194 = vector.shape_cast %193 : vector<1x16x128xf32> to vector<16x128xf32>
    %195 = vector.shape_cast %192 : vector<16x128xf32> to vector<1x16x128xf32>
    tpu.vector_store %arg7[%c2_107, %c0_108, %c0_109], %195 {strides = array<i32>} : memref<4x16x128xf32, #tpu.memory_space<vmem>>, vector<1x16x128xf32>,
    %c2_110 = arith.constant 2 : index
    %c0_111 = arith.constant 0 : index
    %c0_112 = arith.constant 0 : index
    %196 = vector.load %arg8[%c2_110, %c0_111, %c0_112] : memref<4x16x128xf32, #tpu.memory_space<vmem>>, vector<1x16x128xf32>
    %197 = vector.shape_cast %196 : vector<1x16x128xf32> to vector<16x128xf32>
    %198 = arith.addf %197, %189 : vector<16x128xf32>
    %c2_113 = arith.constant 2 : index
    %c0_114 = arith.constant 0 : index
    %c0_115 = arith.constant 0 : index
    %199 = vector.load %arg8[%c2_113, %c0_114, %c0_115] : memref<4x16x128xf32, #tpu.memory_space<vmem>>, vector<1x16x128xf32>
    %200 = vector.shape_cast %199 : vector<1x16x128xf32> to vector<16x128xf32>
    %201 = vector.shape_cast %198 : vector<16x128xf32> to vector<1x16x128xf32>
    tpu.vector_store %arg8[%c2_113, %c0_114, %c0_115], %201 {strides = array<i32>} : memref<4x16x128xf32, #tpu.memory_space<vmem>>, vector<1x16x128xf32>,
    %c2_116 = arith.constant 2 : index
    %c0_117 = arith.constant 0 : index
    %c0_118 = arith.constant 0 : index
    %202 = vector.load %arg9[%c2_116, %c0_117, %c0_118] : memref<4x16x128xf32, #tpu.memory_space<vmem>>, vector<1x16x128xf32>
    %203 = vector.shape_cast %202 : vector<1x16x128xf32> to vector<16x128xf32>
    %204 = arith.mulf %186, %189 : vector<16x128xf32>
    %205 = arith.addf %203, %204 : vector<16x128xf32>
    %c2_119 = arith.constant 2 : index
    %c0_120 = arith.constant 0 : index
    %c0_121 = arith.constant 0 : index
    %206 = vector.load %arg9[%c2_119, %c0_120, %c0_121] : memref<4x16x128xf32, #tpu.memory_space<vmem>>, vector<1x16x128xf32>
    %207 = vector.shape_cast %206 : vector<1x16x128xf32> to vector<16x128xf32>
    %208 = vector.shape_cast %205 : vector<16x128xf32> to vector<1x16x128xf32>
    tpu.vector_store %arg9[%c2_119, %c0_120, %c0_121], %208 {strides = array<i32>} : memref<4x16x128xf32, #tpu.memory_space<vmem>>, vector<1x16x128xf32>,
    %c1_i32_122 = arith.constant 1 : i32
    %209 = tpu.dynamic_rotate %189 by %c1_i32_122 dim 1 : vector<16x128xf32>, i32 -> vector<16x128xf32>
    %210 = tpu.iota {dimensions = array<i32: 1>} : vector<16x128xi32>
    %c1_i32_123 = arith.constant 1 : i32
    %211 = vector.broadcast %c1_i32_123 : i32 to vector<16x128xi32>
    %212 = arith.cmpi sge, %210, %211 : vector<16x128xi32>
    %cst_124 = arith.constant 0.000000e+00 : f32
    %213 = vector.broadcast %cst_124 : f32 to vector<16x128xf32>
    %214 = arith.select %212, %209, %213 : vector<16x128xi1>, vector<16x128xf32>
    %c127_i32_125 = arith.constant 127 : i32
    %215 = tpu.dynamic_rotate %189 by %c127_i32_125 dim 1 : vector<16x128xf32>, i32 -> vector<16x128xf32>
    %216 = tpu.iota {dimensions = array<i32: 1>} : vector<16x128xi32>
    %c127_i32_126 = arith.constant 127 : i32
    %217 = vector.broadcast %c127_i32_126 : i32 to vector<16x128xi32>
    %218 = arith.cmpi slt, %216, %217 : vector<16x128xi32>
    %cst_127 = arith.constant 0.000000e+00 : f32
    %219 = vector.broadcast %cst_127 : f32 to vector<16x128xf32>
    %220 = arith.select %218, %215, %219 : vector<16x128xi1>, vector<16x128xf32>
    %221 = arith.subf %214, %220 : vector<16x128xf32>
    %cst_128 = arith.constant 2.000000e+00 : f32
    %222 = vector.broadcast %cst_128 : f32 to vector<16x128xf32>
    %223 = arith.mulf %222, %189 : vector<16x128xf32>
    %224 = arith.addf %214, %223 : vector<16x128xf32>
    %225 = arith.addf %224, %220 : vector<16x128xf32>
    %c1_i32_129 = arith.constant 1 : i32
    %226 = tpu.dynamic_rotate %221 by %c1_i32_129 dim 0 : vector<16x128xf32>, i32 -> vector<16x128xf32>
    %227 = tpu.iota {dimensions = array<i32: 0>} : vector<16x128xi32>
    %c1_i32_130 = arith.constant 1 : i32
    %228 = vector.broadcast %c1_i32_130 : i32 to vector<16x128xi32>
    %229 = arith.cmpi sge, %227, %228 : vector<16x128xi32>
    %cst_131 = arith.constant 0.000000e+00 : f32
    %230 = vector.broadcast %cst_131 : f32 to vector<16x128xf32>
    %231 = arith.select %229, %226, %230 : vector<16x128xi1>, vector<16x128xf32>
    %cst_132 = arith.constant 2.000000e+00 : f32
    %232 = vector.broadcast %cst_132 : f32 to vector<16x128xf32>
    %233 = arith.mulf %232, %221 : vector<16x128xf32>
    %234 = arith.addf %231, %233 : vector<16x128xf32>
    %c15_i32_133 = arith.constant 15 : i32
    %235 = tpu.dynamic_rotate %221 by %c15_i32_133 dim 0 : vector<16x128xf32>, i32 -> vector<16x128xf32>
    %236 = tpu.iota {dimensions = array<i32: 0>} : vector<16x128xi32>
    %c15_i32_134 = arith.constant 15 : i32
    %237 = vector.broadcast %c15_i32_134 : i32 to vector<16x128xi32>
    %238 = arith.cmpi slt, %236, %237 : vector<16x128xi32>
    %cst_135 = arith.constant 0.000000e+00 : f32
    %239 = vector.broadcast %cst_135 : f32 to vector<16x128xf32>
    %240 = arith.select %238, %235, %239 : vector<16x128xi1>, vector<16x128xf32>
    %241 = arith.addf %234, %240 : vector<16x128xf32>
    %c1_i32_136 = arith.constant 1 : i32
    %242 = tpu.dynamic_rotate %225 by %c1_i32_136 dim 0 : vector<16x128xf32>, i32 -> vector<16x128xf32>
    %243 = tpu.iota {dimensions = array<i32: 0>} : vector<16x128xi32>
    %c1_i32_137 = arith.constant 1 : i32
    %244 = vector.broadcast %c1_i32_137 : i32 to vector<16x128xi32>
    %245 = arith.cmpi sge, %243, %244 : vector<16x128xi32>
    %cst_138 = arith.constant 0.000000e+00 : f32
    %246 = vector.broadcast %cst_138 : f32 to vector<16x128xf32>
    %247 = arith.select %245, %242, %246 : vector<16x128xi1>, vector<16x128xf32>
    %c15_i32_139 = arith.constant 15 : i32
    %248 = tpu.dynamic_rotate %225 by %c15_i32_139 dim 0 : vector<16x128xf32>, i32 -> vector<16x128xf32>
    %249 = tpu.iota {dimensions = array<i32: 0>} : vector<16x128xi32>
    %c15_i32_140 = arith.constant 15 : i32
    %250 = vector.broadcast %c15_i32_140 : i32 to vector<16x128xi32>
    %251 = arith.cmpi slt, %249, %250 : vector<16x128xi32>
    %cst_141 = arith.constant 0.000000e+00 : f32
    %252 = vector.broadcast %cst_141 : f32 to vector<16x128xf32>
    %253 = arith.select %251, %248, %252 : vector<16x128xi1>, vector<16x128xf32>
    %254 = arith.subf %247, %253 : vector<16x128xf32>
    %255 = arith.mulf %241, %241 : vector<16x128xf32>
    %256 = arith.mulf %254, %254 : vector<16x128xf32>
    %257 = arith.addf %255, %256 : vector<16x128xf32>
    %cst_142 = arith.constant 9.99999997E-7 : f32
    %258 = vector.broadcast %cst_142 : f32 to vector<16x128xf32>
    %259 = arith.addf %257, %258 : vector<16x128xf32>
    %260 = math.sqrt %259 : vector<16x128xf32>
    %c1_i32_143 = arith.constant 1 : i32
    %261 = tpu.dynamic_rotate %186 by %c1_i32_143 dim 1 : vector<16x128xf32>, i32 -> vector<16x128xf32>
    %262 = tpu.iota {dimensions = array<i32: 1>} : vector<16x128xi32>
    %c1_i32_144 = arith.constant 1 : i32
    %263 = vector.broadcast %c1_i32_144 : i32 to vector<16x128xi32>
    %264 = arith.cmpi sge, %262, %263 : vector<16x128xi32>
    %cst_145 = arith.constant 0.000000e+00 : f32
    %265 = vector.broadcast %cst_145 : f32 to vector<16x128xf32>
    %266 = arith.select %264, %261, %265 : vector<16x128xi1>, vector<16x128xf32>
    %c127_i32_146 = arith.constant 127 : i32
    %267 = tpu.dynamic_rotate %186 by %c127_i32_146 dim 1 : vector<16x128xf32>, i32 -> vector<16x128xf32>
    %268 = tpu.iota {dimensions = array<i32: 1>} : vector<16x128xi32>
    %c127_i32_147 = arith.constant 127 : i32
    %269 = vector.broadcast %c127_i32_147 : i32 to vector<16x128xi32>
    %270 = arith.cmpi slt, %268, %269 : vector<16x128xi32>
    %cst_148 = arith.constant 0.000000e+00 : f32
    %271 = vector.broadcast %cst_148 : f32 to vector<16x128xf32>
    %272 = arith.select %270, %267, %271 : vector<16x128xi1>, vector<16x128xf32>
    %273 = arith.subf %266, %272 : vector<16x128xf32>
    %cst_149 = arith.constant 2.000000e+00 : f32
    %274 = vector.broadcast %cst_149 : f32 to vector<16x128xf32>
    %275 = arith.mulf %274, %186 : vector<16x128xf32>
    %276 = arith.addf %266, %275 : vector<16x128xf32>
    %277 = arith.addf %276, %272 : vector<16x128xf32>
    %c1_i32_150 = arith.constant 1 : i32
    %278 = tpu.dynamic_rotate %273 by %c1_i32_150 dim 0 : vector<16x128xf32>, i32 -> vector<16x128xf32>
    %279 = tpu.iota {dimensions = array<i32: 0>} : vector<16x128xi32>
    %c1_i32_151 = arith.constant 1 : i32
    %280 = vector.broadcast %c1_i32_151 : i32 to vector<16x128xi32>
    %281 = arith.cmpi sge, %279, %280 : vector<16x128xi32>
    %cst_152 = arith.constant 0.000000e+00 : f32
    %282 = vector.broadcast %cst_152 : f32 to vector<16x128xf32>
    %283 = arith.select %281, %278, %282 : vector<16x128xi1>, vector<16x128xf32>
    %cst_153 = arith.constant 2.000000e+00 : f32
    %284 = vector.broadcast %cst_153 : f32 to vector<16x128xf32>
    %285 = arith.mulf %284, %273 : vector<16x128xf32>
    %286 = arith.addf %283, %285 : vector<16x128xf32>
    %c15_i32_154 = arith.constant 15 : i32
    %287 = tpu.dynamic_rotate %273 by %c15_i32_154 dim 0 : vector<16x128xf32>, i32 -> vector<16x128xf32>
    %288 = tpu.iota {dimensions = array<i32: 0>} : vector<16x128xi32>
    %c15_i32_155 = arith.constant 15 : i32
    %289 = vector.broadcast %c15_i32_155 : i32 to vector<16x128xi32>
    %290 = arith.cmpi slt, %288, %289 : vector<16x128xi32>
    %cst_156 = arith.constant 0.000000e+00 : f32
    %291 = vector.broadcast %cst_156 : f32 to vector<16x128xf32>
    %292 = arith.select %290, %287, %291 : vector<16x128xi1>, vector<16x128xf32>
    %293 = arith.addf %286, %292 : vector<16x128xf32>
    %c1_i32_157 = arith.constant 1 : i32
    %294 = tpu.dynamic_rotate %277 by %c1_i32_157 dim 0 : vector<16x128xf32>, i32 -> vector<16x128xf32>
    %295 = tpu.iota {dimensions = array<i32: 0>} : vector<16x128xi32>
    %c1_i32_158 = arith.constant 1 : i32
    %296 = vector.broadcast %c1_i32_158 : i32 to vector<16x128xi32>
    %297 = arith.cmpi sge, %295, %296 : vector<16x128xi32>
    %cst_159 = arith.constant 0.000000e+00 : f32
    %298 = vector.broadcast %cst_159 : f32 to vector<16x128xf32>
    %299 = arith.select %297, %294, %298 : vector<16x128xi1>, vector<16x128xf32>
    %c15_i32_160 = arith.constant 15 : i32
    %300 = tpu.dynamic_rotate %277 by %c15_i32_160 dim 0 : vector<16x128xf32>, i32 -> vector<16x128xf32>
    %301 = tpu.iota {dimensions = array<i32: 0>} : vector<16x128xi32>
    %c15_i32_161 = arith.constant 15 : i32
    %302 = vector.broadcast %c15_i32_161 : i32 to vector<16x128xi32>
    %303 = arith.cmpi slt, %301, %302 : vector<16x128xi32>
    %cst_162 = arith.constant 0.000000e+00 : f32
    %304 = vector.broadcast %cst_162 : f32 to vector<16x128xf32>
    %305 = arith.select %303, %300, %304 : vector<16x128xi1>, vector<16x128xf32>
    %306 = arith.subf %299, %305 : vector<16x128xf32>
    %307 = arith.mulf %293, %293 : vector<16x128xf32>
    %308 = arith.mulf %306, %306 : vector<16x128xf32>
    %309 = arith.addf %307, %308 : vector<16x128xf32>
    %cst_163 = arith.constant 9.99999997E-7 : f32
    %310 = vector.broadcast %cst_163 : f32 to vector<16x128xf32>
    %311 = arith.addf %309, %310 : vector<16x128xf32>
    %312 = math.sqrt %311 : vector<16x128xf32>
    %313 = arith.subf %260, %312 : vector<16x128xf32>
    %c0_164 = arith.constant 0 : index
    %c0_165 = arith.constant 0 : index
    %314 = vector.load %arg10[%c0_164, %c0_165] : memref<16x128xf32, #tpu.memory_space<vmem>>, vector<16x128xf32>
    %315 = arith.mulf %313, %313 : vector<16x128xf32>
    %316 = arith.addf %314, %315 : vector<16x128xf32>
    %c0_166 = arith.constant 0 : index
    %c0_167 = arith.constant 0 : index
    %317 = vector.load %arg10[%c0_166, %c0_167] : memref<16x128xf32, #tpu.memory_space<vmem>>, vector<16x128xf32>
    tpu.vector_store %arg10[%c0_166, %c0_167], %316 {strides = array<i32>} : memref<16x128xf32, #tpu.memory_space<vmem>>, vector<16x128xf32>,
    %318 = arith.mulf %25, %30 : vector<16x128xf32>
    %c0_168 = arith.constant 0 : index
    %c3_169 = arith.constant 3 : index
    %c0_170 = arith.constant 0 : index
    %c0_171 = arith.constant 0 : index
    %319 = vector.load %arg2[%c0_168, %c3_169, %c0_170, %c0_171] : memref<1x4x16x128xbf16, #tpu.memory_space<vmem>>, vector<1x1x16x128xbf16>
    %320 = vector.shape_cast %319 : vector<1x1x16x128xbf16> to vector<16x128xbf16>
    %321 = arith.extf %320 : vector<16x128xbf16> to vector<16x128xf32>
    %c3_172 = arith.constant 3 : index
    %c0_173 = arith.constant 0 : index
    %c0_174 = arith.constant 0 : index
    %322 = vector.load %arg7[%c3_172, %c0_173, %c0_174] : memref<4x16x128xf32, #tpu.memory_space<vmem>>, vector<1x16x128xf32>
    %323 = vector.shape_cast %322 : vector<1x16x128xf32> to vector<16x128xf32>
    %324 = arith.addf %323, %318 : vector<16x128xf32>
    %c3_175 = arith.constant 3 : index
    %c0_176 = arith.constant 0 : index
    %c0_177 = arith.constant 0 : index
    %325 = vector.load %arg7[%c3_175, %c0_176, %c0_177] : memref<4x16x128xf32, #tpu.memory_space<vmem>>, vector<1x16x128xf32>
    %326 = vector.shape_cast %325 : vector<1x16x128xf32> to vector<16x128xf32>
    %327 = vector.shape_cast %324 : vector<16x128xf32> to vector<1x16x128xf32>
    tpu.vector_store %arg7[%c3_175, %c0_176, %c0_177], %327 {strides = array<i32>} : memref<4x16x128xf32, #tpu.memory_space<vmem>>, vector<1x16x128xf32>,
    %c3_178 = arith.constant 3 : index
    %c0_179 = arith.constant 0 : index
    %c0_180 = arith.constant 0 : index
    %328 = vector.load %arg8[%c3_178, %c0_179, %c0_180] : memref<4x16x128xf32, #tpu.memory_space<vmem>>, vector<1x16x128xf32>
    %329 = vector.shape_cast %328 : vector<1x16x128xf32> to vector<16x128xf32>
    %330 = arith.addf %329, %321 : vector<16x128xf32>
    %c3_181 = arith.constant 3 : index
    %c0_182 = arith.constant 0 : index
    %c0_183 = arith.constant 0 : index
    %331 = vector.load %arg8[%c3_181, %c0_182, %c0_183] : memref<4x16x128xf32, #tpu.memory_space<vmem>>, vector<1x16x128xf32>
    %332 = vector.shape_cast %331 : vector<1x16x128xf32> to vector<16x128xf32>
    %333 = vector.shape_cast %330 : vector<16x128xf32> to vector<1x16x128xf32>
    tpu.vector_store %arg8[%c3_181, %c0_182, %c0_183], %333 {strides = array<i32>} : memref<4x16x128xf32, #tpu.memory_space<vmem>>, vector<1x16x128xf32>,
    %c3_184 = arith.constant 3 : index
    %c0_185 = arith.constant 0 : index
    %c0_186 = arith.constant 0 : index
    %334 = vector.load %arg9[%c3_184, %c0_185, %c0_186] : memref<4x16x128xf32, #tpu.memory_space<vmem>>, vector<1x16x128xf32>
    %335 = vector.shape_cast %334 : vector<1x16x128xf32> to vector<16x128xf32>
    %336 = arith.mulf %318, %321 : vector<16x128xf32>
    %337 = arith.addf %335, %336 : vector<16x128xf32>
    %c3_187 = arith.constant 3 : index
    %c0_188 = arith.constant 0 : index
    %c0_189 = arith.constant 0 : index
    %338 = vector.load %arg9[%c3_187, %c0_188, %c0_189] : memref<4x16x128xf32, #tpu.memory_space<vmem>>, vector<1x16x128xf32>
    %339 = vector.shape_cast %338 : vector<1x16x128xf32> to vector<16x128xf32>
    %340 = vector.shape_cast %337 : vector<16x128xf32> to vector<1x16x128xf32>
    tpu.vector_store %arg9[%c3_187, %c0_188, %c0_189], %340 {strides = array<i32>} : memref<4x16x128xf32, #tpu.memory_space<vmem>>, vector<1x16x128xf32>,
    %c1_i32_190 = arith.constant 1 : i32
    %341 = tpu.dynamic_rotate %321 by %c1_i32_190 dim 1 : vector<16x128xf32>, i32 -> vector<16x128xf32>
    %342 = tpu.iota {dimensions = array<i32: 1>} : vector<16x128xi32>
    %c1_i32_191 = arith.constant 1 : i32
    %343 = vector.broadcast %c1_i32_191 : i32 to vector<16x128xi32>
    %344 = arith.cmpi sge, %342, %343 : vector<16x128xi32>
    %cst_192 = arith.constant 0.000000e+00 : f32
    %345 = vector.broadcast %cst_192 : f32 to vector<16x128xf32>
    %346 = arith.select %344, %341, %345 : vector<16x128xi1>, vector<16x128xf32>
    %c127_i32_193 = arith.constant 127 : i32
    %347 = tpu.dynamic_rotate %321 by %c127_i32_193 dim 1 : vector<16x128xf32>, i32 -> vector<16x128xf32>
    %348 = tpu.iota {dimensions = array<i32: 1>} : vector<16x128xi32>
    %c127_i32_194 = arith.constant 127 : i32
    %349 = vector.broadcast %c127_i32_194 : i32 to vector<16x128xi32>
    %350 = arith.cmpi slt, %348, %349 : vector<16x128xi32>
    %cst_195 = arith.constant 0.000000e+00 : f32
    %351 = vector.broadcast %cst_195 : f32 to vector<16x128xf32>
    %352 = arith.select %350, %347, %351 : vector<16x128xi1>, vector<16x128xf32>
    %353 = arith.subf %346, %352 : vector<16x128xf32>
    %cst_196 = arith.constant 2.000000e+00 : f32
    %354 = vector.broadcast %cst_196 : f32 to vector<16x128xf32>
    %355 = arith.mulf %354, %321 : vector<16x128xf32>
    %356 = arith.addf %346, %355 : vector<16x128xf32>
    %357 = arith.addf %356, %352 : vector<16x128xf32>
    %c1_i32_197 = arith.constant 1 : i32
    %358 = tpu.dynamic_rotate %353 by %c1_i32_197 dim 0 : vector<16x128xf32>, i32 -> vector<16x128xf32>
    %359 = tpu.iota {dimensions = array<i32: 0>} : vector<16x128xi32>
    %c1_i32_198 = arith.constant 1 : i32
    %360 = vector.broadcast %c1_i32_198 : i32 to vector<16x128xi32>
    %361 = arith.cmpi sge, %359, %360 : vector<16x128xi32>
    %cst_199 = arith.constant 0.000000e+00 : f32
    %362 = vector.broadcast %cst_199 : f32 to vector<16x128xf32>
    %363 = arith.select %361, %358, %362 : vector<16x128xi1>, vector<16x128xf32>
    %cst_200 = arith.constant 2.000000e+00 : f32
    %364 = vector.broadcast %cst_200 : f32 to vector<16x128xf32>
    %365 = arith.mulf %364, %353 : vector<16x128xf32>
    %366 = arith.addf %363, %365 : vector<16x128xf32>
    %c15_i32_201 = arith.constant 15 : i32
    %367 = tpu.dynamic_rotate %353 by %c15_i32_201 dim 0 : vector<16x128xf32>, i32 -> vector<16x128xf32>
    %368 = tpu.iota {dimensions = array<i32: 0>} : vector<16x128xi32>
    %c15_i32_202 = arith.constant 15 : i32
    %369 = vector.broadcast %c15_i32_202 : i32 to vector<16x128xi32>
    %370 = arith.cmpi slt, %368, %369 : vector<16x128xi32>
    %cst_203 = arith.constant 0.000000e+00 : f32
    %371 = vector.broadcast %cst_203 : f32 to vector<16x128xf32>
    %372 = arith.select %370, %367, %371 : vector<16x128xi1>, vector<16x128xf32>
    %373 = arith.addf %366, %372 : vector<16x128xf32>
    %c1_i32_204 = arith.constant 1 : i32
    %374 = tpu.dynamic_rotate %357 by %c1_i32_204 dim 0 : vector<16x128xf32>, i32 -> vector<16x128xf32>
    %375 = tpu.iota {dimensions = array<i32: 0>} : vector<16x128xi32>
    %c1_i32_205 = arith.constant 1 : i32
    %376 = vector.broadcast %c1_i32_205 : i32 to vector<16x128xi32>
    %377 = arith.cmpi sge, %375, %376 : vector<16x128xi32>
    %cst_206 = arith.constant 0.000000e+00 : f32
    %378 = vector.broadcast %cst_206 : f32 to vector<16x128xf32>
    %379 = arith.select %377, %374, %378 : vector<16x128xi1>, vector<16x128xf32>
    %c15_i32_207 = arith.constant 15 : i32
    %380 = tpu.dynamic_rotate %357 by %c15_i32_207 dim 0 : vector<16x128xf32>, i32 -> vector<16x128xf32>
    %381 = tpu.iota {dimensions = array<i32: 0>} : vector<16x128xi32>
    %c15_i32_208 = arith.constant 15 : i32
    %382 = vector.broadcast %c15_i32_208 : i32 to vector<16x128xi32>
    %383 = arith.cmpi slt, %381, %382 : vector<16x128xi32>
    %cst_209 = arith.constant 0.000000e+00 : f32
    %384 = vector.broadcast %cst_209 : f32 to vector<16x128xf32>
    %385 = arith.select %383, %380, %384 : vector<16x128xi1>, vector<16x128xf32>
    %386 = arith.subf %379, %385 : vector<16x128xf32>
    %387 = arith.mulf %373, %373 : vector<16x128xf32>
    %388 = arith.mulf %386, %386 : vector<16x128xf32>
    %389 = arith.addf %387, %388 : vector<16x128xf32>
    %cst_210 = arith.constant 9.99999997E-7 : f32
    %390 = vector.broadcast %cst_210 : f32 to vector<16x128xf32>
    %391 = arith.addf %389, %390 : vector<16x128xf32>
    %392 = math.sqrt %391 : vector<16x128xf32>
    %c1_i32_211 = arith.constant 1 : i32
    %393 = tpu.dynamic_rotate %318 by %c1_i32_211 dim 1 : vector<16x128xf32>, i32 -> vector<16x128xf32>
    %394 = tpu.iota {dimensions = array<i32: 1>} : vector<16x128xi32>
    %c1_i32_212 = arith.constant 1 : i32
    %395 = vector.broadcast %c1_i32_212 : i32 to vector<16x128xi32>
    %396 = arith.cmpi sge, %394, %395 : vector<16x128xi32>
    %cst_213 = arith.constant 0.000000e+00 : f32
    %397 = vector.broadcast %cst_213 : f32 to vector<16x128xf32>
    %398 = arith.select %396, %393, %397 : vector<16x128xi1>, vector<16x128xf32>
    %c127_i32_214 = arith.constant 127 : i32
    %399 = tpu.dynamic_rotate %318 by %c127_i32_214 dim 1 : vector<16x128xf32>, i32 -> vector<16x128xf32>
    %400 = tpu.iota {dimensions = array<i32: 1>} : vector<16x128xi32>
    %c127_i32_215 = arith.constant 127 : i32
    %401 = vector.broadcast %c127_i32_215 : i32 to vector<16x128xi32>
    %402 = arith.cmpi slt, %400, %401 : vector<16x128xi32>
    %cst_216 = arith.constant 0.000000e+00 : f32
    %403 = vector.broadcast %cst_216 : f32 to vector<16x128xf32>
    %404 = arith.select %402, %399, %403 : vector<16x128xi1>, vector<16x128xf32>
    %405 = arith.subf %398, %404 : vector<16x128xf32>
    %cst_217 = arith.constant 2.000000e+00 : f32
    %406 = vector.broadcast %cst_217 : f32 to vector<16x128xf32>
    %407 = arith.mulf %406, %318 : vector<16x128xf32>
    %408 = arith.addf %398, %407 : vector<16x128xf32>
    %409 = arith.addf %408, %404 : vector<16x128xf32>
    %c1_i32_218 = arith.constant 1 : i32
    %410 = tpu.dynamic_rotate %405 by %c1_i32_218 dim 0 : vector<16x128xf32>, i32 -> vector<16x128xf32>
    %411 = tpu.iota {dimensions = array<i32: 0>} : vector<16x128xi32>
    %c1_i32_219 = arith.constant 1 : i32
    %412 = vector.broadcast %c1_i32_219 : i32 to vector<16x128xi32>
    %413 = arith.cmpi sge, %411, %412 : vector<16x128xi32>
    %cst_220 = arith.constant 0.000000e+00 : f32
    %414 = vector.broadcast %cst_220 : f32 to vector<16x128xf32>
    %415 = arith.select %413, %410, %414 : vector<16x128xi1>, vector<16x128xf32>
    %cst_221 = arith.constant 2.000000e+00 : f32
    %416 = vector.broadcast %cst_221 : f32 to vector<16x128xf32>
    %417 = arith.mulf %416, %405 : vector<16x128xf32>
    %418 = arith.addf %415, %417 : vector<16x128xf32>
    %c15_i32_222 = arith.constant 15 : i32
    %419 = tpu.dynamic_rotate %405 by %c15_i32_222 dim 0 : vector<16x128xf32>, i32 -> vector<16x128xf32>
    %420 = tpu.iota {dimensions = array<i32: 0>} : vector<16x128xi32>
    %c15_i32_223 = arith.constant 15 : i32
    %421 = vector.broadcast %c15_i32_223 : i32 to vector<16x128xi32>
    %422 = arith.cmpi slt, %420, %421 : vector<16x128xi32>
    %cst_224 = arith.constant 0.000000e+00 : f32
    %423 = vector.broadcast %cst_224 : f32 to vector<16x128xf32>
    %424 = arith.select %422, %419, %423 : vector<16x128xi1>, vector<16x128xf32>
    %425 = arith.addf %418, %424 : vector<16x128xf32>
    %c1_i32_225 = arith.constant 1 : i32
    %426 = tpu.dynamic_rotate %409 by %c1_i32_225 dim 0 : vector<16x128xf32>, i32 -> vector<16x128xf32>
    %427 = tpu.iota {dimensions = array<i32: 0>} : vector<16x128xi32>
    %c1_i32_226 = arith.constant 1 : i32
    %428 = vector.broadcast %c1_i32_226 : i32 to vector<16x128xi32>
    %429 = arith.cmpi sge, %427, %428 : vector<16x128xi32>
    %cst_227 = arith.constant 0.000000e+00 : f32
    %430 = vector.broadcast %cst_227 : f32 to vector<16x128xf32>
    %431 = arith.select %429, %426, %430 : vector<16x128xi1>, vector<16x128xf32>
    %c15_i32_228 = arith.constant 15 : i32
    %432 = tpu.dynamic_rotate %409 by %c15_i32_228 dim 0 : vector<16x128xf32>, i32 -> vector<16x128xf32>
    %433 = tpu.iota {dimensions = array<i32: 0>} : vector<16x128xi32>
    %c15_i32_229 = arith.constant 15 : i32
    %434 = vector.broadcast %c15_i32_229 : i32 to vector<16x128xi32>
    %435 = arith.cmpi slt, %433, %434 : vector<16x128xi32>
    %cst_230 = arith.constant 0.000000e+00 : f32
    %436 = vector.broadcast %cst_230 : f32 to vector<16x128xf32>
    %437 = arith.select %435, %432, %436 : vector<16x128xi1>, vector<16x128xf32>
    %438 = arith.subf %431, %437 : vector<16x128xf32>
    %439 = arith.mulf %425, %425 : vector<16x128xf32>
    %440 = arith.mulf %438, %438 : vector<16x128xf32>
    %441 = arith.addf %439, %440 : vector<16x128xf32>
    %cst_231 = arith.constant 9.99999997E-7 : f32
    %442 = vector.broadcast %cst_231 : f32 to vector<16x128xf32>
    %443 = arith.addf %441, %442 : vector<16x128xf32>
    %444 = math.sqrt %443 : vector<16x128xf32>
    %445 = arith.subf %392, %444 : vector<16x128xf32>
    %c0_232 = arith.constant 0 : index
    %c0_233 = arith.constant 0 : index
    %446 = vector.load %arg10[%c0_232, %c0_233] : memref<16x128xf32, #tpu.memory_space<vmem>>, vector<16x128xf32>
    %447 = arith.mulf %445, %445 : vector<16x128xf32>
    %448 = arith.addf %446, %447 : vector<16x128xf32>
    %c0_234 = arith.constant 0 : index
    %c0_235 = arith.constant 0 : index
    %449 = vector.load %arg10[%c0_234, %c0_235] : memref<16x128xf32, #tpu.memory_space<vmem>>, vector<16x128xf32>
    tpu.vector_store %arg10[%c0_234, %c0_235], %448 {strides = array<i32>} : memref<16x128xf32, #tpu.memory_space<vmem>>, vector<16x128xf32>,
    %c1_i32_236 = arith.constant 1 : i32
    %450 = arith.cmpi eq, %arg0, %c1_i32_236 : i32
    %451 = arith.extui %450 : i1 to i32
    %c0_i32_237 = arith.constant 0 : i32
    %452 = arith.cmpi ne, %451, %c0_i32_237 : i32
    scf.if %452 {
      %c0_238 = arith.constant 0 : index
      %c0_239 = arith.constant 0 : index
      %c0_240 = arith.constant 0 : index
      %453 = vector.load %arg7[%c0_238, %c0_239, %c0_240] : memref<4x16x128xf32, #tpu.memory_space<vmem>>, vector<1x16x128xf32>
      %454 = vector.shape_cast %453 : vector<1x16x128xf32> to vector<16x128xf32>
      %455 = vector.shape_cast %454 : vector<16x128xf32> to vector<1x16x128xf32>
      %cst_241 = arith.constant dense<0.000000e+00> : vector<1xf32>
      %456 = vector.multi_reduction <add>, %455, %cst_241 [1, 2] : vector<1x16x128xf32> to vector<1xf32>
      %457 = vector.shape_cast %456 : vector<1xf32> to vector<1x1x1xf32>
      %458 = vector.extract %457[0, 0, 0] : f32 from vector<1x1x1xf32>
      %c0_242 = arith.constant 0 : index
      %c0_243 = arith.constant 0 : index
      %c0_244 = arith.constant 0 : index
      %459 = vector.load %arg8[%c0_242, %c0_243, %c0_244] : memref<4x16x128xf32, #tpu.memory_space<vmem>>, vector<1x16x128xf32>
      %460 = vector.shape_cast %459 : vector<1x16x128xf32> to vector<16x128xf32>
      %461 = vector.shape_cast %460 : vector<16x128xf32> to vector<1x16x128xf32>
      %cst_245 = arith.constant dense<0.000000e+00> : vector<1xf32>
      %462 = vector.multi_reduction <add>, %461, %cst_245 [1, 2] : vector<1x16x128xf32> to vector<1xf32>
      %463 = vector.shape_cast %462 : vector<1xf32> to vector<1x1x1xf32>
      %464 = vector.extract %463[0, 0, 0] : f32 from vector<1x1x1xf32>
      %c0_246 = arith.constant 0 : index
      %c0_247 = arith.constant 0 : index
      %c0_248 = arith.constant 0 : index
      %465 = vector.load %arg9[%c0_246, %c0_247, %c0_248] : memref<4x16x128xf32, #tpu.memory_space<vmem>>, vector<1x16x128xf32>
      %466 = vector.shape_cast %465 : vector<1x16x128xf32> to vector<16x128xf32>
      %467 = vector.shape_cast %466 : vector<16x128xf32> to vector<1x16x128xf32>
      %cst_249 = arith.constant dense<0.000000e+00> : vector<1xf32>
      %468 = vector.multi_reduction <add>, %467, %cst_249 [1, 2] : vector<1x16x128xf32> to vector<1xf32>
      %469 = vector.shape_cast %468 : vector<1xf32> to vector<1x1x1xf32>
      %470 = vector.extract %469[0, 0, 0] : f32 from vector<1x1x1xf32>
      %cst_250 = arith.constant 2.000000e+00 : f32
      %471 = arith.mulf %cst_250, %470 : f32
      %cst_251 = arith.constant 9.99999997E-7 : f32
      %472 = arith.addf %471, %cst_251 : f32
      %473 = arith.addf %458, %464 : f32
      %474 = arith.addf %473, %470 : f32
      %cst_252 = arith.constant 9.99999997E-7 : f32
      %475 = arith.addf %474, %cst_252 : f32
      %476 = arith.divf %472, %475 : f32
      %cst_253 = arith.constant 1.000000e+00 : f32
      %477 = arith.subf %cst_253, %476 : f32
      %c0_254 = arith.constant 0 : index
      %478 = memref.load %arg3[%c0_254] : memref<4xf32, #tpu.memory_space<smem>>
      memref.store %477, %arg3[%c0_254] : memref<4xf32, #tpu.memory_space<smem>>
      %cst_255 = arith.constant 0.000000e+00 : f32
      %479 = arith.addf %cst_255, %477 : f32
      %c1_256 = arith.constant 1 : index
      %c0_257 = arith.constant 0 : index
      %c0_258 = arith.constant 0 : index
      %480 = vector.load %arg7[%c1_256, %c0_257, %c0_258] : memref<4x16x128xf32, #tpu.memory_space<vmem>>, vector<1x16x128xf32>
      %481 = vector.shape_cast %480 : vector<1x16x128xf32> to vector<16x128xf32>
      %482 = vector.shape_cast %481 : vector<16x128xf32> to vector<1x16x128xf32>
      %cst_259 = arith.constant dense<0.000000e+00> : vector<1xf32>
      %483 = vector.multi_reduction <add>, %482, %cst_259 [1, 2] : vector<1x16x128xf32> to vector<1xf32>
      %484 = vector.shape_cast %483 : vector<1xf32> to vector<1x1x1xf32>
      %485 = vector.extract %484[0, 0, 0] : f32 from vector<1x1x1xf32>
      %c1_260 = arith.constant 1 : index
      %c0_261 = arith.constant 0 : index
      %c0_262 = arith.constant 0 : index
      %486 = vector.load %arg8[%c1_260, %c0_261, %c0_262] : memref<4x16x128xf32, #tpu.memory_space<vmem>>, vector<1x16x128xf32>
      %487 = vector.shape_cast %486 : vector<1x16x128xf32> to vector<16x128xf32>
      %488 = vector.shape_cast %487 : vector<16x128xf32> to vector<1x16x128xf32>
      %cst_263 = arith.constant dense<0.000000e+00> : vector<1xf32>
      %489 = vector.multi_reduction <add>, %488, %cst_263 [1, 2] : vector<1x16x128xf32> to vector<1xf32>
      %490 = vector.shape_cast %489 : vector<1xf32> to vector<1x1x1xf32>
      %491 = vector.extract %490[0, 0, 0] : f32 from vector<1x1x1xf32>
      %c1_264 = arith.constant 1 : index
      %c0_265 = arith.constant 0 : index
      %c0_266 = arith.constant 0 : index
      %492 = vector.load %arg9[%c1_264, %c0_265, %c0_266] : memref<4x16x128xf32, #tpu.memory_space<vmem>>, vector<1x16x128xf32>
      %493 = vector.shape_cast %492 : vector<1x16x128xf32> to vector<16x128xf32>
      %494 = vector.shape_cast %493 : vector<16x128xf32> to vector<1x16x128xf32>
      %cst_267 = arith.constant dense<0.000000e+00> : vector<1xf32>
      %495 = vector.multi_reduction <add>, %494, %cst_267 [1, 2] : vector<1x16x128xf32> to vector<1xf32>
      %496 = vector.shape_cast %495 : vector<1xf32> to vector<1x1x1xf32>
      %497 = vector.extract %496[0, 0, 0] : f32 from vector<1x1x1xf32>
      %cst_268 = arith.constant 2.000000e+00 : f32
      %498 = arith.mulf %cst_268, %497 : f32
      %cst_269 = arith.constant 9.99999997E-7 : f32
      %499 = arith.addf %498, %cst_269 : f32
      %500 = arith.addf %485, %491 : f32
      %501 = arith.addf %500, %497 : f32
      %cst_270 = arith.constant 9.99999997E-7 : f32
      %502 = arith.addf %501, %cst_270 : f32
      %503 = arith.divf %499, %502 : f32
      %cst_271 = arith.constant 1.000000e+00 : f32
      %504 = arith.subf %cst_271, %503 : f32
      %c1_272 = arith.constant 1 : index
      %505 = memref.load %arg3[%c1_272] : memref<4xf32, #tpu.memory_space<smem>>
      memref.store %504, %arg3[%c1_272] : memref<4xf32, #tpu.memory_space<smem>>
      %506 = arith.addf %479, %504 : f32
      %c2_273 = arith.constant 2 : index
      %c0_274 = arith.constant 0 : index
      %c0_275 = arith.constant 0 : index
      %507 = vector.load %arg7[%c2_273, %c0_274, %c0_275] : memref<4x16x128xf32, #tpu.memory_space<vmem>>, vector<1x16x128xf32>
      %508 = vector.shape_cast %507 : vector<1x16x128xf32> to vector<16x128xf32>
      %509 = vector.shape_cast %508 : vector<16x128xf32> to vector<1x16x128xf32>
      %cst_276 = arith.constant dense<0.000000e+00> : vector<1xf32>
      %510 = vector.multi_reduction <add>, %509, %cst_276 [1, 2] : vector<1x16x128xf32> to vector<1xf32>
      %511 = vector.shape_cast %510 : vector<1xf32> to vector<1x1x1xf32>
      %512 = vector.extract %511[0, 0, 0] : f32 from vector<1x1x1xf32>
      %c2_277 = arith.constant 2 : index
      %c0_278 = arith.constant 0 : index
      %c0_279 = arith.constant 0 : index
      %513 = vector.load %arg8[%c2_277, %c0_278, %c0_279] : memref<4x16x128xf32, #tpu.memory_space<vmem>>, vector<1x16x128xf32>
      %514 = vector.shape_cast %513 : vector<1x16x128xf32> to vector<16x128xf32>
      %515 = vector.shape_cast %514 : vector<16x128xf32> to vector<1x16x128xf32>
      %cst_280 = arith.constant dense<0.000000e+00> : vector<1xf32>
      %516 = vector.multi_reduction <add>, %515, %cst_280 [1, 2] : vector<1x16x128xf32> to vector<1xf32>
      %517 = vector.shape_cast %516 : vector<1xf32> to vector<1x1x1xf32>
      %518 = vector.extract %517[0, 0, 0] : f32 from vector<1x1x1xf32>
      %c2_281 = arith.constant 2 : index
      %c0_282 = arith.constant 0 : index
      %c0_283 = arith.constant 0 : index
      %519 = vector.load %arg9[%c2_281, %c0_282, %c0_283] : memref<4x16x128xf32, #tpu.memory_space<vmem>>, vector<1x16x128xf32>
      %520 = vector.shape_cast %519 : vector<1x16x128xf32> to vector<16x128xf32>
      %521 = vector.shape_cast %520 : vector<16x128xf32> to vector<1x16x128xf32>
      %cst_284 = arith.constant dense<0.000000e+00> : vector<1xf32>
      %522 = vector.multi_reduction <add>, %521, %cst_284 [1, 2] : vector<1x16x128xf32> to vector<1xf32>
      %523 = vector.shape_cast %522 : vector<1xf32> to vector<1x1x1xf32>
      %524 = vector.extract %523[0, 0, 0] : f32 from vector<1x1x1xf32>
      %cst_285 = arith.constant 2.000000e+00 : f32
      %525 = arith.mulf %cst_285, %524 : f32
      %cst_286 = arith.constant 9.99999997E-7 : f32
      %526 = arith.addf %525, %cst_286 : f32
      %527 = arith.addf %512, %518 : f32
      %528 = arith.addf %527, %524 : f32
      %cst_287 = arith.constant 9.99999997E-7 : f32
      %529 = arith.addf %528, %cst_287 : f32
      %530 = arith.divf %526, %529 : f32
      %cst_288 = arith.constant 1.000000e+00 : f32
      %531 = arith.subf %cst_288, %530 : f32
      %c2_289 = arith.constant 2 : index
      %532 = memref.load %arg3[%c2_289] : memref<4xf32, #tpu.memory_space<smem>>
      memref.store %531, %arg3[%c2_289] : memref<4xf32, #tpu.memory_space<smem>>
      %533 = arith.addf %506, %531 : f32
      %c3_290 = arith.constant 3 : index
      %c0_291 = arith.constant 0 : index
      %c0_292 = arith.constant 0 : index
      %534 = vector.load %arg7[%c3_290, %c0_291, %c0_292] : memref<4x16x128xf32, #tpu.memory_space<vmem>>, vector<1x16x128xf32>
      %535 = vector.shape_cast %534 : vector<1x16x128xf32> to vector<16x128xf32>
      %536 = vector.shape_cast %535 : vector<16x128xf32> to vector<1x16x128xf32>
      %cst_293 = arith.constant dense<0.000000e+00> : vector<1xf32>
      %537 = vector.multi_reduction <add>, %536, %cst_293 [1, 2] : vector<1x16x128xf32> to vector<1xf32>
      %538 = vector.shape_cast %537 : vector<1xf32> to vector<1x1x1xf32>
      %539 = vector.extract %538[0, 0, 0] : f32 from vector<1x1x1xf32>
      %c3_294 = arith.constant 3 : index
      %c0_295 = arith.constant 0 : index
      %c0_296 = arith.constant 0 : index
      %540 = vector.load %arg8[%c3_294, %c0_295, %c0_296] : memref<4x16x128xf32, #tpu.memory_space<vmem>>, vector<1x16x128xf32>
      %541 = vector.shape_cast %540 : vector<1x16x128xf32> to vector<16x128xf32>
      %542 = vector.shape_cast %541 : vector<16x128xf32> to vector<1x16x128xf32>
      %cst_297 = arith.constant dense<0.000000e+00> : vector<1xf32>
      %543 = vector.multi_reduction <add>, %542, %cst_297 [1, 2] : vector<1x16x128xf32> to vector<1xf32>
      %544 = vector.shape_cast %543 : vector<1xf32> to vector<1x1x1xf32>
      %545 = vector.extract %544[0, 0, 0] : f32 from vector<1x1x1xf32>
      %c3_298 = arith.constant 3 : index
      %c0_299 = arith.constant 0 : index
      %c0_300 = arith.constant 0 : index
      %546 = vector.load %arg9[%c3_298, %c0_299, %c0_300] : memref<4x16x128xf32, #tpu.memory_space<vmem>>, vector<1x16x128xf32>
      %547 = vector.shape_cast %546 : vector<1x16x128xf32> to vector<16x128xf32>
      %548 = vector.shape_cast %547 : vector<16x128xf32> to vector<1x16x128xf32>
      %cst_301 = arith.constant dense<0.000000e+00> : vector<1xf32>
      %549 = vector.multi_reduction <add>, %548, %cst_301 [1, 2] : vector<1x16x128xf32> to vector<1xf32>
      %550 = vector.shape_cast %549 : vector<1xf32> to vector<1x1x1xf32>
      %551 = vector.extract %550[0, 0, 0] : f32 from vector<1x1x1xf32>
      %cst_302 = arith.constant 2.000000e+00 : f32
      %552 = arith.mulf %cst_302, %551 : f32
      %cst_303 = arith.constant 9.99999997E-7 : f32
      %553 = arith.addf %552, %cst_303 : f32
      %554 = arith.addf %539, %545 : f32
      %555 = arith.addf %554, %551 : f32
      %cst_304 = arith.constant 9.99999997E-7 : f32
      %556 = arith.addf %555, %cst_304 : f32
      %557 = arith.divf %553, %556 : f32
      %cst_305 = arith.constant 1.000000e+00 : f32
      %558 = arith.subf %cst_305, %557 : f32
      %c3_306 = arith.constant 3 : index
      %559 = memref.load %arg3[%c3_306] : memref<4xf32, #tpu.memory_space<smem>>
      memref.store %558, %arg3[%c3_306] : memref<4xf32, #tpu.memory_space<smem>>
      %560 = arith.addf %533, %558 : f32
      %cst_307 = arith.constant 4.000000e+00 : f32
      %561 = arith.divf %560, %cst_307 : f32
      %c0_308 = arith.constant 0 : index
      %c0_309 = arith.constant 0 : index
      %562 = vector.load %arg10[%c0_308, %c0_309] : memref<16x128xf32, #tpu.memory_space<vmem>>, vector<16x128xf32>
      %563 = vector.shape_cast %562 : vector<16x128xf32> to vector<1x16x128xf32>
      %cst_310 = arith.constant dense<0.000000e+00> : vector<1xf32>
      %564 = vector.multi_reduction <add>, %563, %cst_310 [1, 2] : vector<1x16x128xf32> to vector<1xf32>
      %565 = vector.shape_cast %564 : vector<1xf32> to vector<1x1x1xf32>
      %566 = vector.extract %565[0, 0, 0] : f32 from vector<1x1x1xf32>
      %cst_311 = arith.constant 4.096000e+03 : f32
      %567 = arith.divf %566, %cst_311 : f32
      %c0_312 = arith.constant 0 : index
      %568 = memref.load %arg4[%c0_312] : memref<1xf32, #tpu.memory_space<smem>>
      memref.store %561, %arg4[%c0_312] : memref<1xf32, #tpu.memory_space<smem>>
      %c0_313 = arith.constant 0 : index
      %569 = memref.load %arg5[%c0_313] : memref<1xf32, #tpu.memory_space<smem>>
      memref.store %567, %arg5[%c0_313] : memref<1xf32, #tpu.memory_space<smem>>
      %cst_314 = arith.constant 5.000000e-01 : f32
      %570 = arith.mulf %cst_314, %561 : f32
      %cst_315 = arith.constant 5.000000e-01 : f32
      %571 = arith.mulf %cst_315, %567 : f32
      %572 = arith.addf %570, %571 : f32
      %c0_316 = arith.constant 0 : index
      %573 = memref.load %arg6[%c0_316] : memref<1xf32, #tpu.memory_space<smem>>
      memref.store %572, %arg6[%c0_316] : memref<1xf32, #tpu.memory_space<smem>>
    } else {
    }
    return
  }
  func.func @transform_0(%arg0: i32) -> (i32, i32, i32, i32) {
    %c0_i32 = arith.constant 0 : i32
    %c0_i32_0 = arith.constant 0 : i32
    %c0_i32_1 = arith.constant 0 : i32
    %c0_i32_2 = arith.constant 0 : i32
    return %arg0, %c0_i32, %c0_i32_0, %c0_i32_1 : i32, i32, i32, i32
  }
  func.func @transform_1(%arg0: i32) -> (i32, i32, i32, i32) {
    %c0_i32 = arith.constant 0 : i32
    %c0_i32_0 = arith.constant 0 : i32
    %c0_i32_1 = arith.constant 0 : i32
    %c0_i32_2 = arith.constant 0 : i32
    return %arg0, %c0_i32, %c0_i32_0, %c0_i32_1 : i32, i32, i32, i32
  }
  func.func @transform_2(%arg0: i32) -> i32 {
    %c0_i32 = arith.constant 0 : i32
    %c0_i32_0 = arith.constant 0 : i32
    return %c0_i32 : i32
  }
  func.func @transform_3(%arg0: i32) -> i32 {
    %c0_i32 = arith.constant 0 : i32
    %c0_i32_0 = arith.constant 0 : i32
    return %c0_i32 : i32
  }
  func.func @transform_4(%arg0: i32) -> i32 {
    %c0_i32 = arith.constant 0 : i32
    %c0_i32_0 = arith.constant 0 : i32
    return %c0_i32 : i32
  }
  func.func @transform_5(%arg0: i32) -> i32 {
    %c0_i32 = arith.constant 0 : i32
    %c0_i32_0 = arith.constant 0 : i32
    return %c0_i32 : i32
  }
}

</mosaic_0001>

<bundles_post_ra>
// kernel: tpu_custom_call.1
= control target key start
LH: loop header
LB: loop body
LE: loop exit
PB: predicated region body
PF: predicated region fallthrough
CT: control target
= control target key end

     0   :  { %11 = vsyncpa [#allocation7], 0  ;;  %s2700_s0 = inlined_call_operand.hbm [shape: bf16[2,4,16,128], index: 0, kind: input, shape index: {}]   ;;  %s2701_s1 = inlined_call_operand.hbm [shape: bf16[2,4,16,128], index: 1, kind: input, shape index: {}]   ;;  %s2702_s2 = inlined_call_operand.hbm [shape: f32[4], index: 2, kind: output, shape index: {0}]   ;;  %s2703_s3 = inlined_call_operand.hbm [shape: f32[1], index: 3, kind: output, shape index: {1}]   ;;  %s2704_s4 = inlined_call_operand.hbm [shape: f32[1], index: 4, kind: output, shape index: {2}]   ;;  %s2705_s5 = inlined_call_operand.hbm [shape: f32[1], index: 5, kind: output, shape index: {3}]  }
   0x1   :  { %13 = vsyncpa [#allocation7 + $0x1], 0 }
   0x2   :  { %14 = vsyncpa [#allocation10], 0 }
   0x3   :  { %16 = vsyncpa [#allocation10 + $0x1], 0 }
   0x4   :  { %17 = vsyncpa [#allocation8], 0 }
   0x5   :  { %18 = vsyncpa [#allocation13], 0 }
   0x6   :  { %19 = vsyncpa [#allocation16], 0  ;;  %s1972_s18 = smov 0   ;;  %s1974_s19 = smov 0  }
   0x7   :  { %s1976_s20 = smov 0   ;;  %s1978_s21 = smov 0  }
   0x8 LB: > { %s1991_s22 = sadd.s32 4294967295, %s1929_s21   ;;  %s1994_s23 = sadd.s32 1, %s1929_s21   ;;  %s1929_s21 = sphi %s1978_s21, %s2715_s21   ;;  %s1925_s20 = sphi %s1976_s20, %s2714_s20   ;;  %s1921_s19 = sphi %s1974_s19, %s2713_s19   ;;  %s1917_s18 = sphi %s1972_s18, %s2712_s18  }
   0x9   : > { %s29_s24 = ssub.s32 %s1929_s21, %s1994_s23  ;;  %s32_s25 = sadd.s32 1, %s1925_s20 }
   0xa   : > { %p30_p0 = scmp.eq.s32.totalorder %s29_s24, 0  ;;  %p39_p1 = scmp.ne.s32.totalorder %s1925_s20, %s1921_s19 }
   0xb   : > { %p40_p2 = scmp.eq.s32.totalorder %s1929_s21, 0  ;;  %p45_p3 = scmp.ne.s32.totalorder %s1921_s19, %s1917_s18 }
   0xc   : > { %s2004_s26 = scalar_select %p30_p0, %s1925_s20, %s32_s25  }
   0xd   : > { %p2006_p4 = por %p40_p2, %p39_p1  ;;  %p46_p5 = scmp.eq.s32.totalorder %s1991_s22, 0 }
   0xe   : > { %p1625_p6 = scmp.lt.s32.totalorder %s1929_s21, 2  ;;  %s2017_s29 = sand.u32 1, %s1925_s20  }
   0xf   : > { %p2012_p7 = por %p46_p5, %p45_p3  ;;  %s1487_s30 = sshll.u32 %s2017_s29, 5 }
  0x10   : > { %s1520_s6 = sshll.u32 %s1929_s21, 5  ;;  %s183_s10 = scalar_lea.vmem [#allocation6], %s1487_s30 }
  0x11   : > { %s188_s9 = scalar_lea.hbm %s2700_s0, %s1520_s6  ;;  %s191_s11 = sshll.u32 %s183_s10, 4  ;;  %s192_s11 = int_to_ptr.vmem [resolvable:$true] %s191_s11 }
  0x12   : > { %s189_s12 = sshll.u32 %s188_s9, 4  ;;  %p2030_p8 = pnand %p1625_p6, %p2006_p4  ;;  %s190_s12 = int_to_ptr.hbm [resolvable:$true] %s189_s12 }
  0x13   : > { %p1493_p9 = scmp.ge.s32.totalorder %s1929_s21, 1  ;;  %s180_s14 = scalar_lea.sflag [#allocation7], %s2017_s29 }
  0x14   : > { %s1763_s15 = sshra.s32 %s190_s12, 4  ;;  %p1767_p11 = pneg %p2030_p8  ;;  %s1764_s15 = int_to_ptr.hbm [resolvable:$true] %s1763_s15 }
  0x15   : > { %s1765_s16 = scalar_lea.hbm %s1764_s15, 32  ;;  %s1770_s24 = scalar_lea.hbm %s2700_s0, 64 }
  0x16   : > { %p1766_p10 = scmp.ne.s32.totalorder %s1764_s15, %s1765_s16  ;;  %p1771_p0 = scmp.lt.s32.totalorder %s1764_s15, %s2700_s0 }
  0x17   : > { %p1772_p1 = scmp.lt.s32.totalorder %s1770_s24, %s1765_s16 }
  0x18   : > { %p1768_p12 = pnand %p1767_p11, %p1766_p10 }
  0x19   : > { %p1773_p2 = por %p1772_p1, %p1771_p0 }
  0x1a   : > { %p1769_p13 = pneg %p1768_p12 }
  0x1c   : > { %p1774_p3 = pnand %p1773_p2, %p1769_p13 }
  0x1e   : > { %1777 = shalt.err (!%p1774_p3)
}
  0x1f   : > { %s1931_s7 = smov 64   ;;  %s1932_s8 = smov 4  }
  0x20   : > { %1621 = dma.hbm_to_vmem [thread:$0]  (!%p2030_p8), %s190_s12, 512, %s192_s11, %s180_s14, %s1931_s7, %s1931_s7, %s1932_s8  }
  0x21   : > { %p221_p4 = scmp.lt.s32.totalorder %s1929_s21, 3  ;;  %s210_s15 = scalar_lea.hbm %s2701_s1, %s1520_s6 }
  0x22   : > { %s211_s17 = sshll.u32 %s210_s15, 4  ;;  %s205_s18 = scalar_lea.vmem [#allocation9], %s1487_s30  ;;  %s212_s17 = int_to_ptr.hbm [resolvable:$true] %s211_s17 }
  0x23   : > { %p2057_p5 = pnand %p1493_p9, %p221_p4  ;;  %s213_s24 = sshll.u32 %s205_s18, 4  ;;  %s214_s24 = int_to_ptr.vmem [resolvable:$true] %s213_s24 }
  0x24   : > { %s202_s25 = scalar_lea.sflag [#allocation10], %s2017_s29  ;;  %s1793_s27 = sshra.s32 %s212_s17, 4  ;;  %s1794_s27 = int_to_ptr.hbm [resolvable:$true] %s1793_s27 }
  0x25   : > { %s1795_s11 = scalar_lea.hbm %s1794_s27, 32  ;;  %s1800_s12 = scalar_lea.hbm %s2701_s1, 64 }
  0x26   : > { %p1796_p6 = scmp.ne.s32.totalorder %s1794_s27, %s1795_s11  ;;  %p1801_p9 = scmp.lt.s32.totalorder %s1794_s27, %s2701_s1 }
  0x27   : > { %p1802_p13 = scmp.lt.s32.totalorder %s1800_s12, %s1795_s11 }
  0x28   : > { %p1798_p10 = pnand %p1796_p6, %p1767_p11 }
  0x29   : > { %p1803_p0 = por %p1802_p13, %p1801_p9 }
  0x2a   : > { %p1799_p12 = pneg %p1798_p10 }
  0x2c   : > { %p1804_p1 = pnand %p1803_p0, %p1799_p12 }
  0x2e   : > { %1807 = shalt.err (!%p1804_p1)
}
  0x2f   : > { %1624 = dma.hbm_to_vmem [thread:$0]  (!%p2030_p8), %s212_s17, 512, %s214_s24, %s202_s25, %s1931_s7, %s1931_s7, %s1932_s8  }
  0x30   : > { %225 = sbr.rel (%p2057_p5) target bundleno = 877 (0x36d), region = 28  ;;  %s227_s29 = sand.u32 (!%p2057_p5), 1, %s1921_s19  }
  0x31   : > { %s1494_s30 = sshll.u32 (!%p2057_p5), %s227_s29, 5  ;;  %s228_s10 = scalar_lea.sflag (!%p2057_p5), [#allocation7], %s227_s29 }
  0x32   : > { %s2078_s15 = scalar_lea.vmem (!%p2057_p5), [#allocation6], %s1494_s30 }
  0x35   : > { %1896 = dma.done.wait (%p2012_p7), %s228_s10, 512  }
  0x36   : > { %1898 = vsyncadd (%p2012_p7), %s228_s10, 4294966784  ;;  %s238_s18 = scalar_lea.sflag [#allocation10], %s227_s29  ;;  %s2084_s27 = scalar_lea.vmem [#allocation9], %s1494_s30 }
  0x37   : > { %1900 = dma.done.wait (%p2012_p7), %s238_s18, 512  }
  0x38   : > { %1902 = vsyncadd (%p2012_p7), %s238_s18, 4294966784  ;;  %p1496_p8 = scmp.ne.s32.totalorder %s1991_s22, 0 }
  0x3a   : > { %272 = sbr.rel (%p1496_p8) target bundleno = 90 (0x5a), region = 40 }
  0x3f   : > { %v1933_v0 = vmov 0.0  }
  0x40   : > { %273 = vst [vmem:[#allocation2 + $0x30] sm:$0xff] %v1933_v0 }
  0x41   : > { %274 = vst [vmem:[#allocation2] sm:$0xff] %v1933_v0 }
  0x42   : > { %275 = vst [vmem:[#allocation2 + $0x18] sm:$0xff] %v1933_v0 }
  0x43   : > { %276 = vst [vmem:[#allocation2 + $0x10] sm:$0xff] %v1933_v0 }
  0x44   : > { %277 = vst [vmem:[#allocation2 + $0x8] sm:$0xff] %v1933_v0 }
  0x45   : > { %278 = vst [vmem:[#allocation2 + $0x20] sm:$0xff] %v1933_v0 }
  0x46   : > { %279 = vst [vmem:[#allocation2 + $0x28] sm:$0xff] %v1933_v0 }
  0x47   : > { %280 = vst [vmem:[#allocation2 + $0x38] sm:$0xff] %v1933_v0 }
  0x48   : > { %281 = vst [vmem:[#allocation3] sm:$0xff] %v1933_v0 }
  0x49   : > { %282 = vst [vmem:[#allocation3 + $0x18] sm:$0xff] %v1933_v0 }
  0x4a   : > { %283 = vst [vmem:[#allocation3 + $0x10] sm:$0xff] %v1933_v0 }
  0x4b   : > { %284 = vst [vmem:[#allocation3 + $0x20] sm:$0xff] %v1933_v0 }
  0x4c   : > { %285 = vst [vmem:[#allocation3 + $0x28] sm:$0xff] %v1933_v0 }
  0x4d   : > { %286 = vst [vmem:[#allocation3 + $0x8] sm:$0xff] %v1933_v0 }
  0x4e   : > { %287 = vst [vmem:[#allocation3 + $0x30] sm:$0xff] %v1933_v0 }
  0x4f   : > { %288 = vst [vmem:[#allocation3 + $0x38] sm:$0xff] %v1933_v0 }
  0x50   : > { %289 = vst [vmem:[#allocation4 + $0x28] sm:$0xff] %v1933_v0 }
  0x51   : > { %290 = vst [vmem:[#allocation4 + $0x20] sm:$0xff] %v1933_v0 }
  0x52   : > { %291 = vst [vmem:[#allocation4 + $0x38] sm:$0xff] %v1933_v0 }
  0x53   : > { %292 = vst [vmem:[#allocation4 + $0x10] sm:$0xff] %v1933_v0 }
  0x54   : > { %293 = vst [vmem:[#allocation4 + $0x8] sm:$0xff] %v1933_v0 }
  0x55   : > { %294 = vst [vmem:[#allocation4 + $0x30] sm:$0xff] %v1933_v0 }
  0x56   : > { %295 = vst [vmem:[#allocation4 + $0x18] sm:$0xff] %v1933_v0 }
  0x57   : > { %296 = vst [vmem:[#allocation4] sm:$0xff] %v1933_v0 }
  0x58   : > { %297 = vst [vmem:[#allocation5 + $0x8] sm:$0xff] %v1933_v0 }
  0x59   : > { %298 = vst [vmem:[#allocation5] sm:$0xff] %v1933_v0 }
  0x5a PF: > { %v1557_v1 = vld [vmem:[%s2084_s27 + $0x8] sm:$0xff]   ;;  %v425_v2 = vld [vmem:[#allocation3 + $0x10] sm:$0xff]  ;;  %v426_v3 = vld [vmem:[#allocation3 + $0x20] sm:$0xff]  ;;  %s1934_s28 = smov 1   ;;  %s1935_s13 = smov 127  }
  0x5b   : > { %v2092_v4 = vunpack.c.l.bf16 %v1557_v1  ;;  %v2094_v5 = vunpack.c.h.bf16 %v1557_v1  ;;  %v1558_v6 = vld [vmem:[%s2084_s27 + $0x10] sm:$0xff]   ;;  %v646_v7 = vld [vmem:[#allocation3 + $0x28] sm:$0xff]  ;;  %v1523_v11 = vld [vmem:[%s2078_s15] sm:$0xff]   ;;  %p1509_p7 = scmp.ne.s32.totalorder %s1991_s22, 1 }
  0x5c   : > { %v647_v8 = vld [vmem:[#allocation3 + $0x8] sm:$0xff]  ;;  %v2097_v9 = vunpack.c.l.bf16 %v1558_v6  ;;  %v2099_v10 = vunpack.c.h.bf16 %v1558_v6  ;;  %v1554_v12 = vld [vmem:[%s2078_s15 + $0x8] sm:$0xff]   ;;  %v1555_v13 = vld [vmem:[%s2078_s15 + $0x10] sm:$0xff]   ;;  %v1524_v21 = vunpack.c.l.bf16 %v1523_v11  ;;  %v1525_v24 = vunpack.c.h.bf16 %v1523_v11 }
  0x5d   : > { %v428_v14 = vadd.f32 %v2094_v5, %v426_v3  ;;  %v1677_v15 = vpack.i.bf16 %v2094_v5, %v2092_v4  ;;  %v427_v16 = vadd.f32 %v2092_v4, %v425_v2  ;;  %v1556_v20 = vld [vmem:[%s2078_s15 + $0x18] sm:$0xff]   ;;  %v1528_v22 = vunpack.c.l.bf16 %v1554_v12  ;;  %v2117_v46 = vld [vmem:[%s2084_s27] sm:$0xff]   ;;  %v396_v47 = vld [vmem:[#allocation3] sm:$0xff] }
  0x5e   : > { %v649_v17 = vadd.f32 %v2099_v10, %v647_v8  ;;  %v1692_v18 = vpack.i.bf16 %v2099_v10, %v2097_v9  ;;  %v648_v19 = vadd.f32 %v2097_v9, %v646_v7  ;;  %v1532_v23 = vunpack.c.l.bf16 %v1555_v13  ;;  %v397_v60 = vld [vmem:[#allocation3 + $0x18] sm:$0xff] }
  0x5f   : > { %430 = vst [vmem:[#allocation3 + $0x20] sm:$0xff] %v428_v14  ;;  %1678 = vrot.lane.b32.xlu0 %v1677_v15, %s1934_s28  ;;  %v1529_v25 = vunpack.c.h.bf16 %v1554_v12  ;;  %v1533_v26 = vunpack.c.h.bf16 %v1555_v13  ;;  %v1536_v27 = vunpack.c.l.bf16 %v1556_v20  ;;  %v318_v28 = vmax.f32 %v1524_v21, %v1528_v22  ;;  %v1559_v12 = vld [vmem:[%s2084_s27 + $0x18] sm:$0xff]   ;;  %v854_v13 = vld [vmem:[#allocation3 + $0x30] sm:$0xff]  ;;  %v855_v14 = vld [vmem:[#allocation3 + $0x38] sm:$0xff] }
  0x60   : > { %429 = vst [vmem:[#allocation3 + $0x10] sm:$0xff] %v427_v16  ;;  %1693 = vrot.lane.b32.xlu1 %v1692_v18, %s1935_s13  ;;  %v1537_v29 = vunpack.c.h.bf16 %v1556_v20  ;;  %v1540_v48 = vunpack.c.l.bf16 %v2117_v46  ;;  %v1541_v57 = vunpack.c.h.bf16 %v2117_v46  ;;  %v2144_v16 = vunpack.c.h.bf16 %v1559_v12 }
  0x61   : > { %651 = vst [vmem:[#allocation3 + $0x8] sm:$0xff] %v649_v17  ;;  %v319_v30 = vmax.f32 %v1525_v24, %v1529_v25  ;;  %v320_v31 = vmax.f32 %v318_v28, %v1532_v23 }
  0x62   : > { %650 = vst [vmem:[#allocation3 + $0x28] sm:$0xff] %v648_v19  ;;  %v398_v52 = vadd.f32 %v1540_v48, %v396_v47  ;;  %v399_v62 = vadd.f32 %v1541_v57, %v397_v60 }
  0x63   : > { %v321_v32 = vmax.f32 %v319_v30, %v1533_v26  ;;  %v322_v33 = vmax.f32 %v320_v31, %v1536_v27 }
  0x64   : > { %400 = vst [vmem:[#allocation3] sm:$0xff] %v398_v52 }
  0x65   : > { %v323_v34 = vmax.f32 %v321_v32, %v1537_v29  ;;  %v324_v35 = vsub.f32 %v1524_v21, %v322_v33  ;;  %v330_v36 = vsub.f32 %v1528_v22, %v322_v33  ;;  %v336_v37 = vsub.f32 %v1532_v23, %v322_v33  ;;  %401 = vst [vmem:[#allocation3 + $0x18] sm:$0xff] %v399_v62 }
  0x66   : > { %v342_v38 = vsub.f32 %v1536_v27, %v322_v33 }
  0x67   : > { %1683 = vrot.lane.b32.xlu0 %v1677_v15, %s1935_s13  ;;  %v325_v39 = vsub.f32 %v1525_v24, %v323_v34  ;;  %v331_v40 = vsub.f32 %v1529_v25, %v323_v34  ;;  %v326_v41 = vmul.f32 1.442695, %v324_v35  ;;  %v332_v42 = vmul.f32 1.442695, %v330_v36  ;;  %v418_v35 = vld [vmem:[#allocation2 + $0x18] sm:$0xff] }
  0x68   : > { %v338_v43 = vmul.f32 1.442695, %v336_v37  ;;  %v337_v44 = vsub.f32 %v1533_v26, %v323_v34  ;;  %v344_v45 = vmul.f32 1.442695, %v342_v38  ;;  %v343_v50 = vsub.f32 %v1537_v29, %v323_v34  ;;  %v390_v34 = vld [vmem:[#allocation2 + $0x30] sm:$0xff] }
  0x69   : > { %1707 = vpow2.f32 %v326_v41  ;;  %v328_v49 = vmul.f32 1.442695, %v325_v39  ;;  %v334_v51 = vmul.f32 1.442695, %v331_v40  ;;  %v2142_v15 = vunpack.c.l.bf16 %v1559_v12  ;;  %v402_v41 = vld [vmem:[#allocation4 + $0x28] sm:$0xff] }
  0x6a   : > { %1709 = vpow2.f32 %v332_v42  ;;  %v340_v53 = vmul.f32 1.442695, %v337_v44  ;;  %v346_v54 = vmul.f32 1.442695, %v343_v50  ;;  %v432_v42 = vld [vmem:[#allocation4 + $0x38] sm:$0xff] }
  0x6b   : > { %1711 = vpow2.f32 %v338_v43  ;;  %v856_v19 = vadd.f32 %v2142_v15, %v854_v13  ;;  %v654_v13 = vld [vmem:[#allocation4 + $0x30] sm:$0xff] }
  0x6c   : > { %1713 = vpow2.f32 %v344_v45  ;;  %v639_v45 = vld [vmem:[#allocation2 + $0x8] sm:$0xff] }
  0x6d   : > { %1715 = vpow2.f32 %v328_v49  ;;  %858 = vst [vmem:[#allocation3 + $0x30] sm:$0xff] %v856_v19  ;;  %v848_v19 = vld [vmem:[#allocation2 + $0x38] sm:$0xff] }
  0x6e   : > { %1717 = vpow2.f32 %v334_v51 }
  0x6f   : > { %1688 = vrot.lane.b32.xlu0 %v1692_v18, %s1934_s28  ;;  %v1708_v55 = vpop.eup %1707  ;;  %1719 = vpow2.f32 %v340_v53  ;;  %v857_v18 = vadd.f32 %v2144_v16, %v855_v14 }
  0x70   : > { %v1710_v56 = vpop.eup %1709  ;;  %1721 = vpow2.f32 %v346_v54 }
  0x71   : > { %v1712_v58 = vpop.eup %1711  ;;  %v348_v59 = vadd.f32 %v1710_v56, %v1708_v55  ;;  %859 = vst [vmem:[#allocation3 + $0x38] sm:$0xff] %v857_v18 }
  0x72   : > { %v2124_v61 = vpop.eup %1713 }
  0x73   : > { %v2128_v63 = vpop.eup %1715  ;;  %v350_v0 = vadd.f32 %v1712_v58, %v348_v59 }
  0x74   : > { %v2130_v1 = vpop.eup %1717 }
  0x75   : > { %v2132_v2 = vpop.eup %1719  ;;  %v352_v3 = vadd.f32 %v2124_v61, %v350_v0  ;;  %v349_v6 = vadd.f32 %v2130_v1, %v2128_v63  ;;  %v403_v0 = vld [vmem:[#allocation4 + $0x20] sm:$0xff] }
  0x76   : > { %v2137_v7 = vpop.eup %1721 }
  0x77   : > { %1723 = vrcp.f32 %v352_v3  ;;  %v351_v8 = vadd.f32 %v2132_v2, %v349_v6  ;;  %v365_v21 = vand.u32 2147483648, %v352_v3  ;;  %vm359_vm0 = vweird.f32 %v352_v3  ;;  %v640_v6 = vld [vmem:[#allocation2 + $0x20] sm:$0xff] }
  0x78   : > { %v363_v23 = vand.u32 2147483647, %v352_v3 }
  0x79   : > { %v353_v11 = vadd.f32 %v2137_v7, %v351_v8  ;;  %v366_v26 = vor.u32 1.1754944e-38, %v365_v21 }
  0x7a   : > { %vm364_vm3 = vcmp.eq.f32.partialorder %v363_v23, 8.507059e+37 }
  0x7b   : > { %1725 = vrcp.f32 %v353_v11  ;;  %v380_v29 = vand.u32 2147483648, %v353_v11  ;;  %vm374_vm4 = vweird.f32 %v353_v11  ;;  %v378_v31 = vand.u32 2147483647, %v353_v11 }
  0x7d   : > { %v1724_v17 = vpop.eup %1723  ;;  %v381_v40 = vor.u32 1.1754944e-38, %v380_v29  ;;  %vm379_vm7 = vcmp.eq.f32.partialorder %v378_v31, 8.507059e+37 }
  0x7e   : > { %v355_v20 = vmul.f32 %v1724_v17, %v352_v3  ;;  %vm360_vm1 = vweird.f32 %v1724_v17  ;;  %v433_v3 = vld [vmem:[#allocation4 + $0x10] sm:$0xff] }
  0x7f   : > { %vm361_vm2 = vmor %vm359_vm0, %vm360_vm1 }
  0x80   : > { %v356_v22 = vsub.f32 1.0, %v355_v20 }
  0x81   : > { %v1726_v24 = vpop.eup %1725 }
  0x82   : > { %v357_v25 = vmul.f32 %v1724_v17, %v356_v22  ;;  %v370_v27 = vmul.f32 %v1726_v24, %v353_v11  ;;  %vm375_vm5 = vweird.f32 %v1726_v24  ;;  %v862_v22 = vld [vmem:[#allocation4] sm:$0xff] }
  0x83   : > { %vm2150_vm6 = vmor %vm374_vm4, %vm375_vm5 }
  0x84   : > { %v358_v28 = vadd.f32 %v1724_v17, %v357_v25  ;;  %v371_v30 = vsub.f32 1.0, %v370_v27  ;;  %v1697_v25 = vpack.i.bf16 %v2144_v16, %v2142_v15  ;;  %v861_v27 = vld [vmem:[#allocation4 + $0x18] sm:$0xff] }
  0x86   : > { %v362_v32 = vsel %vm361_vm2, %v1724_v17, %v358_v28  ;;  %v372_v36 = vmul.f32 %v1726_v24, %v371_v30 }
  0x87   : > { %v367_v33 = vsel %vm364_vm3, %v366_v26, %v362_v32  ;;  %v444_v32 = vlaneseq }
  0x88   : > { %v2148_v37 = vmul.f32 %v1710_v56, %v367_v33  ;;  %v384_v38 = vmul.f32 %v1708_v55, %v367_v33  ;;  %v373_v43 = vadd.f32 %v1726_v24, %v372_v36  ;;  %v2154_v44 = vmul.f32 %v1712_v58, %v367_v33  ;;  %v391_v56 = vld [vmem:[#allocation2] sm:$0xff]  ;;  %v419_v58 = vld [vmem:[#allocation2 + $0x10] sm:$0xff] }
  0x89   : > { %v2190_v17 = vmul.f32 %v2124_v61, %v367_v33  ;;  %v847_v61 = vld [vmem:[#allocation2 + $0x28] sm:$0xff]  ;;  %v2221_v33 = vand.u32 127, %v444_v32 }
  0x8a   : > { %537 = vrot.lane.b32.xlu1 %v2148_v37, %s1934_s28  ;;  %v392_v47 = vadd.f32 %v390_v34, %v384_v38  ;;  %v404_v49 = vmul.f32 %v1540_v48, %v384_v38  ;;  %v420_v50 = vadd.f32 %v418_v35, %v2148_v37  ;;  %v434_v51 = vmul.f32 %v2092_v4, %v2148_v37 }
  0x8b   : > { %v377_v52 = vsel %vm2150_vm6, %v1726_v24, %v373_v43  ;;  %543 = vrot.lane.b32.xlu2 %v2148_v37, %s1935_s13  ;;  %v641_v59 = vadd.f32 %v639_v45, %v2154_v44  ;;  %v655_v8 = vmul.f32 %v2097_v9, %v2154_v44  ;;  %v863_v24 = vmul.f32 %v2142_v15, %v2190_v17 }
  0x8c   : > { %394 = vst [vmem:[#allocation2 + $0x30] sm:$0xff] %v392_v47  ;;  %v406_v53 = vadd.f32 %v404_v49, %v402_v41  ;;  %v436_v54 = vadd.f32 %v434_v51, %v432_v42  ;;  %v382_v55 = vsel %vm379_vm7, %v381_v40, %v377_v52  ;;  %v849_v29 = vadd.f32 %v847_v61, %v2190_v17 }
  0x8d   : > { %422 = vst [vmem:[#allocation2 + $0x18] sm:$0xff] %v420_v50  ;;  %v385_v48 = vmul.f32 %v2128_v63, %v382_v55  ;;  %v2170_v60 = vmul.f32 %v2130_v1, %v382_v55  ;;  %v2173_v62 = vmul.f32 %v2132_v2, %v382_v55  ;;  %v2178_v11 = vmul.f32 %v2137_v7, %v382_v55  ;;  %v653_v7 = vld [vmem:[#allocation4 + $0x8] sm:$0xff] }
  0x8e   : > { %408 = vst [vmem:[#allocation4 + $0x28] sm:$0xff] %v406_v53  ;;  %v657_v23 = vadd.f32 %v655_v8, %v653_v7  ;;  %v865_v30 = vadd.f32 %v863_v24, %v861_v27  ;;  %vm446_vm8 = vcmp.ge.s32.totalorder %v2221_v33, 1  ;;  %vm453_vm9 = vcmp.lt.s32.totalorder %v2221_v33, 127 }
  0x8f   : > { %438 = vst [vmem:[#allocation4 + $0x38] sm:$0xff] %v436_v54  ;;  %v393_v12 = vadd.f32 %v391_v56, %v385_v48  ;;  %v405_v63 = vmul.f32 %v1541_v57, %v385_v48  ;;  %v421_v1 = vadd.f32 %v419_v58, %v2170_v60  ;;  %v435_v2 = vmul.f32 %v2094_v5, %v2170_v60 }
  0x90   : > { %747 = vrot.lane.b32.xlu0 %v2173_v62, %s1934_s28  ;;  %v656_v14 = vmul.f32 %v2099_v10, %v2173_v62  ;;  %643 = vst [vmem:[#allocation2 + $0x8] sm:$0xff] %v641_v59  ;;  %v642_v18 = vadd.f32 %v640_v6, %v2173_v62  ;;  %v864_v20 = vmul.f32 %v2144_v16, %v2178_v11  ;;  %v459_v40 = vmul.f32 2.0, %v2094_v5 }
  0x91   : > { %395 = vst [vmem:[#allocation2] sm:$0xff] %v393_v12  ;;  %v407_v46 = vadd.f32 %v405_v63, %v403_v0  ;;  %v437_v57 = vadd.f32 %v435_v2, %v433_v3  ;;  %v850_v26 = vadd.f32 %v848_v19, %v2178_v11  ;;  %v458_v41 = vmul.f32 2.0, %v2092_v4 }
  0x92   : > { %423 = vst [vmem:[#allocation2 + $0x10] sm:$0xff] %v421_v1  ;;  %539 = vrot.lane.b32.xlu1 %v2170_v60, %s1934_s28  ;;  %v658_v21 = vadd.f32 %v656_v14, %v654_v13  ;;  %v866_v28 = vadd.f32 %v864_v20, %v862_v22  ;;  %v2235_v51 = vshrl.u32 %v444_v32, 7  ;;  %v675_v20 = vmul.f32 2.0, %v2097_v9 }
  0x93   : > { %409 = vst [vmem:[#allocation4 + $0x20] sm:$0xff] %v407_v46  ;;  %545 = vrot.lane.b32.xlu2 %v2170_v60, %s1935_s13 }
  0x94   : > { %439 = vst [vmem:[#allocation4 + $0x10] sm:$0xff] %v437_v57  ;;  %vm468_vm10 = vcmp.lt.s32.totalorder %v2235_v51, 1  ;;  %v2241_v59 = vadd.s32 8, %v2235_v51  ;;  %vm472_vm11 = vcmp.ge.s32.totalorder %v2235_v51, 1  ;;  %vm482_vm12 = vcmp.lt.s32.totalorder %v2235_v51, 7 }
  0x95   : > { %644 = vst [vmem:[#allocation2 + $0x20] sm:$0xff] %v642_v18 }
  0x96   : > { %660 = vst [vmem:[#allocation4 + $0x30] sm:$0xff] %v658_v21  ;;  %vm486_vm13 = vcmp.lt.s32.totalorder %v2241_v59, 15  ;;  %v676_v21 = vmul.f32 2.0, %v2099_v10 }
  0x97   : > { %659 = vst [vmem:[#allocation4 + $0x8] sm:$0xff] %v657_v23 }
  0x98   : > { %1698 = vrot.lane.b32.xlu0 %v1697_v25, %s1934_s28  ;;  %852 = vst [vmem:[#allocation2 + $0x38] sm:$0xff] %v850_v26 }
  0x99   : > { %868 = vst [vmem:[#allocation4] sm:$0xff] %v866_v28 }
  0x9a   : > { %751 = vrot.lane.b32.xlu1 %v2154_v44, %s1935_s13  ;;  %851 = vst [vmem:[#allocation2 + $0x28] sm:$0xff] %v849_v29 }
  0x9b   : > { %745 = vrot.lane.b32.xlu2 %v2154_v44, %s1934_s28  ;;  %867 = vst [vmem:[#allocation4 + $0x18] sm:$0xff] %v865_v30 }
  0xa0   : > { %955 = vrot.lane.b32.xlu0 %v2178_v11, %s1934_s28 }
  0xa2   : > { %1703 = vrot.lane.b32.xlu1 %v1697_v25, %s1935_s13 }
  0xa3   : > { %753 = vrot.lane.b32.xlu2 %v2173_v62, %s1935_s13 }
  0xaa   : > { %959 = vrot.lane.b32.xlu1 %v2190_v17, %s1935_s13 }
  0xab   : > { %953 = vrot.lane.b32.xlu2 %v2190_v17, %s1934_s28 }
  0xb3   : > { %961 = vrot.lane.b32.xlu2 %v2178_v11, %s1935_s13 }
  0xd1   : > { %v1679_v31 = vpop.permute.xlu0 %1678 }
  0xd2   : > { %v1681_v35 = vunpack.i.h.bf16 %v1679_v31  ;;  %v1680_v36 = vunpack.i.l.bf16 %v1679_v31  ;;  %v1694_v58 = vpop.permute.xlu1 %1693 }
  0xd3   : > { %v1695_v1 = vunpack.i.l.bf16 %v1694_v58  ;;  %v1696_v13 = vunpack.i.h.bf16 %v1694_v58 }
  0xd4   : > { %v448_v42 = vsel %vm446_vm8, %v1681_v35, 0.0  ;;  %v447_v43 = vsel %vm446_vm8, %v1680_v36, 0.0 }
  0xd5   : > { %v461_v52 = vadd.f32 %v459_v40, %v448_v42  ;;  %v460_v5 = vadd.f32 %v458_v41, %v447_v43  ;;  %v671_v24 = vsel %vm453_vm9, %v1695_v1, 0.0  ;;  %v672_v26 = vsel %vm453_vm9, %v1696_v13, 0.0 }
  0xd9   : > { %v1684_v34 = vpop.permute.xlu0 %1683 }
  0xda   : > { %v1686_v38 = vunpack.i.h.bf16 %v1684_v34  ;;  %v1685_v39 = vunpack.i.l.bf16 %v1684_v34 }
  0xdc   : > { %v455_v45 = vsel %vm453_vm9, %v1686_v38, 0.0  ;;  %v454_v47 = vsel %vm453_vm9, %v1685_v39, 0.0 }
  0xdd   : > { %v456_v49 = vsub.f32 %v447_v43, %v454_v47  ;;  %v457_v50 = vsub.f32 %v448_v42, %v455_v45  ;;  %v462_v54 = vadd.f32 %v460_v5, %v454_v47  ;;  %v463_v55 = vadd.f32 %v461_v52, %v455_v45 }
  0xdf   : > { %v464_v53 = vrot.slane %v456_v49, 7  ;;  %v465_v4 = vrot.slane %v457_v50, 7  ;;  %v491_v3 = vrot.slane %v462_v54, 7  ;;  %v492_v6 = vrot.slane %v463_v55, 7 }
  0xe0   : > { %v476_v8 = vmul.f32 2.0, %v456_v49  ;;  %v480_v12 = vrot.slane %v456_v49, 1  ;;  %v481_v63 = vrot.slane %v457_v50, 1  ;;  %v497_v46 = vrot.slane %v462_v54, 1 }
  0xe1   : > { %v470_v48 = vsel %vm468_vm10, %v465_v4, %v464_v53  ;;  %v1689_v0 = vpop.permute.xlu0 %1688  ;;  %v498_v57 = vrot.slane %v463_v55, 1  ;;  %v477_v18 = vmul.f32 2.0, %v457_v50  ;;  %v494_v19 = vsel %vm468_vm10, %v492_v6, %v491_v3 }
  0xe2   : > { %v474_v2 = vsel %vm472_vm11, %v470_v48, 0.0  ;;  %v1691_v14 = vunpack.i.h.bf16 %v1689_v0  ;;  %v1690_v7 = vunpack.i.l.bf16 %v1689_v0  ;;  %v469_v22 = vsel %vm468_vm10, %v464_v53, %v465_v4 }
  0xe3   : > { %v478_v23 = vadd.f32 %v476_v8, %v474_v2  ;;  %v484_v61 = vsel %vm482_vm12, %v481_v63, %v480_v12  ;;  %v483_v25 = vsel %vm482_vm12, %v480_v12, %v481_v63  ;;  %v495_v27 = vsel %vm472_vm11, %v494_v19, 0.0 }
  0xe4   : > { %v666_v9 = vsel %vm446_vm8, %v1691_v14, 0.0  ;;  %v665_v10 = vsel %vm446_vm8, %v1690_v7, 0.0  ;;  %v499_v28 = vsel %vm482_vm12, %v497_v46, %v498_v57  ;;  %v500_v29 = vsel %vm482_vm12, %v498_v57, %v497_v46 }
  0xe5   : > { %v2238_v56 = vpop.permute.xlu2 %543  ;;  %v479_v31 = vadd.f32 %v477_v18, %v469_v22  ;;  %v488_v32 = vsel %vm486_vm13, %v484_v61, 0.0  ;;  %v489_v34 = vadd.f32 %v483_v25, %v478_v23  ;;  %v493_v35 = vsel %vm468_vm10, %v491_v3, %v492_v6 }
  0xe6   : > { %v674_v36 = vsub.f32 %v666_v9, %v672_v26  ;;  %v673_v38 = vsub.f32 %v665_v10, %v671_v24  ;;  %v502_v39 = vsel %vm486_vm13, %v500_v29, 0.0  ;;  %v503_v40 = vsub.f32 %v495_v27, %v499_v28 }
  0xe7   : > { %v678_v41 = vadd.f32 %v676_v21, %v666_v9  ;;  %v677_v42 = vadd.f32 %v675_v20, %v665_v10  ;;  %v490_v43 = vadd.f32 %v488_v32, %v479_v31  ;;  %v504_v45 = vsub.f32 %v493_v35, %v502_v39 }
  0xe8   : > { %v682_v47 = vrot.slane %v674_v36, 7  ;;  %v681_v49 = vrot.slane %v673_v38, 7  ;;  %v505_v50 = vmul.f32 %v489_v34, %v489_v34  ;;  %v507_v52 = vmul.f32 %v503_v40, %v503_v40 }
  0xe9   : > { %v680_v5 = vadd.f32 %v678_v41, %v672_v26  ;;  %v679_v53 = vadd.f32 %v677_v42, %v671_v24  ;;  %v506_v54 = vmul.f32 %v490_v43, %v490_v43  ;;  %v508_v55 = vmul.f32 %v504_v45, %v504_v45 }
  0xea   : > { %v692_v58 = vrot.slane %v674_v36, 1  ;;  %v684_v48 = vsel %vm468_vm10, %v682_v47, %v681_v49  ;;  %v691_v0 = vrot.slane %v673_v38, 1  ;;  %v509_v6 = vadd.f32 %v507_v52, %v505_v50 }
  0xeb   : > { %v688_v8 = vmul.f32 2.0, %v674_v36  ;;  %v700_v12 = vrot.slane %v680_v5, 7  ;;  %v699_v63 = vrot.slane %v679_v53, 7  ;;  %v683_v1 = vsel %vm468_vm10, %v681_v49, %v682_v47 }
  0xec   : > { %v687_v2 = vmul.f32 2.0, %v673_v38  ;;  %v706_v13 = vrot.slane %v680_v5, 1  ;;  %v685_v14 = vsel %vm472_vm11, %v684_v48, 0.0  ;;  %v705_v7 = vrot.slane %v679_v53, 1 }
  0xed   : > { %v546_v30 = vpop.permute.xlu2 %545  ;;  %v694_v57 = vsel %vm482_vm12, %v692_v58, %v691_v0  ;;  %v547_v18 = vsel %vm453_vm9, %v2238_v56, 0.0  ;;  %v551_v19 = vmul.f32 2.0, %v2148_v37  ;;  %v552_v20 = vmul.f32 2.0, %v2170_v60 }
  0xee   : > { %v510_v21 = vadd.f32 %v508_v55, %v506_v54  ;;  %v2295_v22 = vadd.f32 1e-06, %v509_v6  ;;  %v690_v23 = vadd.f32 %v688_v8, %v683_v1  ;;  %v702_v61 = vsel %vm468_vm10, %v700_v12, %v699_v63 }
  0xef   : > { %v689_v24 = vadd.f32 %v687_v2, %v685_v14  ;;  %v693_v25 = vsel %vm482_vm12, %v691_v0, %v692_v58  ;;  %v548_v26 = vsel %vm453_vm9, %v546_v30, 0.0  ;;  %v696_v37 = vsel %vm486_vm13, %v694_v57, 0.0 }
  0xf0   : > { %v707_v60 = vsel %vm482_vm12, %v705_v7, %v706_v13  ;;  %v708_v10 = vsel %vm482_vm12, %v706_v13, %v705_v7  ;;  %v703_v28 = vsel %vm472_vm11, %v702_v61, 0.0  ;;  %v2313_v32 = vadd.f32 1e-06, %v510_v21 }
  0xf1   : > { %1727 = vrsqrt.f32 %v2295_v22  ;;  %v701_v34 = vsel %vm468_vm10, %v699_v63, %v700_v12  ;;  %v710_v36 = vsel %vm486_vm13, %v708_v10, 0.0  ;;  %v697_v42 = vadd.f32 %v693_v25, %v689_v24 }
  0xf2   : > { %v698_v43 = vadd.f32 %v696_v37, %v690_v23  ;;  %v711_v45 = vsub.f32 %v703_v28, %v707_v60  ;;  %v760_v47 = vmul.f32 2.0, %v2173_v62  ;;  %v712_v53 = vsub.f32 %v701_v34, %v710_v36 }
  0xf3   : > { %v713_v7 = vmul.f32 %v697_v42, %v697_v42  ;;  %1729 = vrsqrt.f32 %v2313_v32  ;;  %vm520_vm14 = vcmp.eq.f32.partialorder %v2295_v22, inf  ;;  %vm522_vm15 = vcmp.eq.f32.partialorder %v2295_v22, 0.0 }
  0xf4   : > { %v715_v57 = vmul.f32 %v711_v45, %v711_v45  ;;  %v716_v61 = vmul.f32 %v712_v53, %v712_v53  ;;  %vm532_vm0 = vcmp.eq.f32.partialorder %v2313_v32, inf  ;;  %vm534_vm2 = vcmp.eq.f32.partialorder %v2313_v32, 0.0 }
  0xf5   : > { %v746_v3 = vpop.permute.xlu2 %745 }
  0xf6   : > { %v749_v54 = vsel %vm446_vm8, %v746_v3, 0.0 }
  0xf7   : > { %v2330_v6 = vpop.eup %1727 }
  0xfc   : > { %v538_v4 = vpop.permute.xlu1 %537 }
  0xfd   : > { %v541_v46 = vsel %vm446_vm8, %v538_v4, 0.0  ;;  %v754_v41 = vpop.permute.xlu2 %753  ;;  %v759_v4 = vmul.f32 2.0, %v2154_v44 }
  0xfe   : > { %v549_v9 = vsub.f32 %v541_v46, %v547_v18  ;;  %v553_v29 = vadd.f32 %v551_v19, %v541_v46  ;;  %v756_v55 = vsel %vm453_vm9, %v754_v41, 0.0  ;;  %v714_v46 = vmul.f32 %v698_v43, %v698_v43 }
 0x100   : > { %v557_v38 = vrot.slane %v549_v9, 7  ;;  %v555_v49 = vadd.f32 %v553_v29, %v547_v18  ;;  %v563_v58 = vmul.f32 2.0, %v549_v9  ;;  %v567_v48 = vrot.slane %v549_v9, 1 }
 0x101   : > { %v761_v18 = vadd.f32 %v759_v4, %v749_v54 }
 0x102   : > { %v748_v35 = vpop.permute.xlu0 %747  ;;  %v575_v1 = vrot.slane %v555_v49, 7  ;;  %v581_v2 = vrot.slane %v555_v49, 1 }
 0x103   : > { %v750_v5 = vsel %vm446_vm8, %v748_v35, 0.0  ;;  %v717_v35 = vadd.f32 %v715_v57, %v713_v7 }
 0x104   : > { %v540_v56 = vpop.permute.xlu1 %539  ;;  %v762_v44 = vadd.f32 %v760_v47, %v750_v5  ;;  %v758_v13 = vsub.f32 %v750_v5, %v756_v55  ;;  %v718_v47 = vadd.f32 %v716_v61, %v714_v46 }
 0x105   : > { %v542_v27 = vsel %vm446_vm8, %v540_v56, 0.0 }
 0x106   : > { %v550_v31 = vsub.f32 %v542_v27, %v548_v26  ;;  %v554_v30 = vadd.f32 %v552_v20, %v542_v27  ;;  %v764_v25 = vadd.f32 %v762_v44, %v756_v55  ;;  %v766_v56 = vrot.slane %v758_v13, 7 }
 0x107   : > { %v776_v36 = vrot.slane %v758_v13, 1  ;;  %v772_v4 = vmul.f32 2.0, %v758_v13 }
 0x108   : > { %v556_v39 = vadd.f32 %v554_v30, %v548_v26  ;;  %v558_v40 = vrot.slane %v550_v31, 7  ;;  %v568_v52 = vrot.slane %v550_v31, 1  ;;  %v564_v62 = vmul.f32 2.0, %v550_v31 }
 0x109   : > { %v790_v49 = vrot.slane %v764_v25, 1 }
 0x10a   : > { %v560_v50 = vsel %vm468_vm10, %v558_v40, %v557_v38  ;;  %v576_v0 = vrot.slane %v556_v39, 7  ;;  %v559_v8 = vsel %vm468_vm10, %v557_v38, %v558_v40  ;;  %v582_v63 = vrot.slane %v556_v39, 1  ;;  %v1699_v45 = vpop.permute.xlu0 %1698 }
 0x10b   : > { %v561_v12 = vsel %vm472_vm11, %v560_v50, 0.0  ;;  %v570_v3 = vsel %vm482_vm12, %v568_v52, %v567_v48  ;;  %v566_v20 = vadd.f32 %v564_v62, %v559_v8  ;;  %v569_v9 = vsel %vm482_vm12, %v567_v48, %v568_v52 }
 0x10c   : > { %v752_v14 = vpop.permute.xlu1 %751  ;;  %v565_v19 = vadd.f32 %v563_v58, %v561_v12  ;;  %v578_v21 = vsel %vm468_vm10, %v576_v0, %v575_v1  ;;  %v584_v23 = vsel %vm482_vm12, %v582_v63, %v581_v2  ;;  %v572_v24 = vsel %vm486_vm13, %v570_v3, 0.0 }
 0x10d   : > { %v755_v26 = vsel %vm453_vm9, %v752_v14, 0.0  ;;  %v577_v10 = vsel %vm468_vm10, %v575_v1, %v576_v0  ;;  %v579_v27 = vsel %vm472_vm11, %v578_v21, 0.0  ;;  %v583_v28 = vsel %vm482_vm12, %v581_v2, %v582_v63  ;;  %v2365_v0 = vpop.eup %1729 }
 0x10e   : > { %v757_v37 = vsub.f32 %v749_v54, %v755_v26  ;;  %v763_v60 = vadd.f32 %v761_v18, %v755_v26  ;;  %v586_v29 = vsel %vm486_vm13, %v584_v23, 0.0  ;;  %v573_v31 = vadd.f32 %v569_v9, %v565_v19 }
 0x10f   : > { %v574_v30 = vadd.f32 %v572_v24, %v566_v20  ;;  %v784_v38 = vrot.slane %v764_v25, 7  ;;  %v587_v40 = vsub.f32 %v579_v27, %v583_v28  ;;  %v588_v41 = vsub.f32 %v577_v10, %v586_v29 }
 0x110   : > { %v765_v34 = vrot.slane %v757_v37, 7  ;;  %v775_v39 = vrot.slane %v757_v37, 1  ;;  %v783_v43 = vrot.slane %v763_v60, 7  ;;  %v789_v52 = vrot.slane %v763_v60, 1 }
 0x111   : > { %v589_v5 = vmul.f32 %v573_v31, %v573_v31  ;;  %v590_v53 = vmul.f32 %v574_v30, %v574_v30  ;;  %v771_v54 = vmul.f32 2.0, %v757_v37  ;;  %v1701_v48 = vunpack.i.h.bf16 %v1699_v45 }
 0x112   : > { %v768_v42 = vsel %vm468_vm10, %v766_v56, %v765_v34  ;;  %v767_v55 = vsel %vm468_vm10, %v765_v34, %v766_v56  ;;  %v778_v58 = vsel %vm482_vm12, %v776_v36, %v775_v39  ;;  %v1700_v62 = vunpack.i.l.bf16 %v1699_v45 }
 0x113   : > { %v769_v50 = vsel %vm472_vm11, %v768_v42, 0.0  ;;  %v591_v8 = vmul.f32 %v587_v40, %v587_v40  ;;  %v592_v12 = vmul.f32 %v588_v41, %v588_v41  ;;  %v786_v44 = vsel %vm468_vm10, %v784_v38, %v783_v43 }
 0x114   : > { %v773_v63 = vadd.f32 %v771_v54, %v769_v50  ;;  %v1704_v1 = vpop.permute.xlu1 %1703  ;;  %v777_v2 = vsel %vm482_vm12, %v775_v39, %v776_v36  ;;  %v787_v3 = vsel %vm472_vm11, %v786_v44, 0.0  ;;  %v791_v13 = vsel %vm482_vm12, %v789_v52, %v790_v49 }
 0x115   : > { %v792_v14 = vsel %vm482_vm12, %v790_v49, %v789_v52  ;;  %v774_v7 = vadd.f32 %v772_v4, %v767_v55  ;;  %v780_v46 = vsel %vm486_vm13, %v778_v58, 0.0  ;;  %v884_v18 = vmul.f32 2.0, %v2144_v16 }
 0x116   : > { %v781_v57 = vadd.f32 %v777_v2, %v773_v63  ;;  %v785_v19 = vsel %vm468_vm10, %v783_v43, %v784_v38  ;;  %v794_v20 = vsel %vm486_vm13, %v792_v14, 0.0  ;;  %v1706_v21 = vunpack.i.h.bf16 %v1704_v1 }
 0x117   : > { %v1705_v23 = vunpack.i.l.bf16 %v1704_v1  ;;  %v593_v61 = vadd.f32 %v591_v8, %v589_v5  ;;  %v795_v24 = vsub.f32 %v787_v3, %v791_v13  ;;  %v883_v25 = vmul.f32 2.0, %v2142_v15 }
 0x118   : > { %v874_v26 = vsel %vm446_vm8, %v1701_v48, 0.0  ;;  %v2387_v9 = vadd.f32 1e-06, %v717_v35  ;;  %v594_v56 = vadd.f32 %v592_v12, %v590_v53  ;;  %v873_v16 = vsel %vm446_vm8, %v1700_v62, 0.0 }
 0x119   : > { %v880_v37 = vsel %vm453_vm9, %v1706_v21, 0.0  ;;  %v782_v60 = vadd.f32 %v780_v46, %v774_v7  ;;  %v796_v10 = vsub.f32 %v785_v19, %v794_v20  ;;  %v797_v27 = vmul.f32 %v781_v57, %v781_v57 }
 0x11a   : > { %v879_v28 = vsel %vm453_vm9, %v1705_v23, 0.0  ;;  %v2395_v29 = vadd.f32 1e-06, %v718_v47  ;;  %v886_v15 = vadd.f32 %v884_v18, %v874_v26  ;;  %v882_v31 = vsub.f32 %v874_v26, %v880_v37  ;;  %v954_v47 = vpop.permute.xlu2 %953 }
 0x11b   : > { %v2397_v30 = vadd.f32 1e-06, %v593_v61  ;;  %v799_v34 = vmul.f32 %v795_v24, %v795_v24  ;;  %v885_v35 = vadd.f32 %v883_v25, %v873_v16  ;;  %v514_v36 = vmul.f32 %v2330_v6, %v2295_v22  ;;  %v956_v25 = vpop.permute.xlu0 %955 }
 0x11c   : > { %1731 = vrsqrt.f32 %v2387_v9  ;;  %v881_v38 = vsub.f32 %v873_v16, %v879_v28  ;;  %v2402_v39 = vadd.f32 1e-06, %v594_v56  ;;  %v798_v40 = vmul.f32 %v782_v60, %v782_v60 }
 0x11d   : > { %v800_v41 = vmul.f32 %v796_v10, %v796_v10  ;;  %v801_v42 = vadd.f32 %v799_v34, %v797_v27  ;;  %1733 = vrsqrt.f32 %v2395_v29  ;;  %v888_v43 = vadd.f32 %v886_v15, %v880_v37 }
 0x11e   : > { %v890_v45 = vrot.slane %v882_v31, 7  ;;  %1735 = vrsqrt.f32 %v2397_v30  ;;  %v896_v49 = vmul.f32 2.0, %v882_v31  ;;  %v900_v50 = vrot.slane %v882_v31, 1 }
 0x11f   : > { %v887_v52 = vadd.f32 %v885_v35, %v879_v28  ;;  %v526_v5 = vmul.f32 %v2365_v0, %v2313_v32  ;;  %v889_v53 = vrot.slane %v881_v38, 7  ;;  %v899_v4 = vrot.slane %v881_v38, 1 }
 0x120   : > { %v515_v54 = vmul.f32 %v2330_v6, %v514_v36  ;;  %1737 = vrsqrt.f32 %v2402_v39  ;;  %v802_v55 = vadd.f32 %v800_v41, %v798_v40  ;;  %v2410_v58 = vadd.f32 1e-06, %v801_v42 }
 0x121   : > { %v908_v62 = vrot.slane %v888_v43, 7  ;;  %v891_v8 = vsel %vm468_vm10, %v889_v53, %v890_v45  ;;  %v892_v12 = vsel %vm468_vm10, %v890_v45, %v889_v53  ;;  %v895_v63 = vmul.f32 2.0, %v881_v38 }
 0x122   : > { %v2412_v48 = vpop.eup %1731  ;;  %v893_v44 = vsel %vm472_vm11, %v892_v12, 0.0  ;;  %v898_v1 = vadd.f32 %v896_v49, %v891_v8  ;;  %v902_v2 = vsel %vm482_vm12, %v900_v50, %v899_v4  ;;  %v907_v3 = vrot.slane %v887_v52, 7  ;;  %v962_v36 = vpop.permute.xlu2 %961 }
 0x123   : > { %v2422_v13 = vpop.eup %1733  ;;  %v914_v14 = vrot.slane %v888_v43, 1  ;;  %v897_v7 = vadd.f32 %v895_v63, %v893_v44  ;;  %v904_v46 = vsel %vm486_vm13, %v902_v2, 0.0  ;;  %v913_v57 = vrot.slane %v887_v52, 1 }
 0x124   : > { %v2426_v18 = vpop.eup %1735  ;;  %v527_v19 = vmul.f32 %v2365_v0, %v526_v5  ;;  %v901_v20 = vsel %vm482_vm12, %v899_v4, %v900_v50  ;;  %v516_v21 = vmul.f32 0.5, %v515_v54  ;;  %v722_v23 = vmul.f32 %v2412_v48, %v2387_v9 }
 0x125   : > { %v2433_v61 = vadd.f32 1e-06, %v802_v55  ;;  %v905_v24 = vadd.f32 %v901_v20, %v897_v7  ;;  %v734_v56 = vmul.f32 %v2422_v13, %v2395_v29  ;;  %1739 = vrsqrt.f32 %v2410_v58 }
 0x126   : > { %v2435_v26 = vpop.eup %1737  ;;  %v906_v16 = vadd.f32 %v904_v46, %v898_v1  ;;  %v910_v37 = vsel %vm468_vm10, %v908_v62, %v907_v3  ;;  %v598_v60 = vmul.f32 %v2426_v18, %v2397_v30  ;;  %v909_v10 = vsel %vm468_vm10, %v907_v3, %v908_v62 }
 0x127   : > { %v911_v27 = vsel %vm472_vm11, %v910_v37, 0.0  ;;  %v915_v28 = vsel %vm482_vm12, %v913_v57, %v914_v14  ;;  %v916_v15 = vsel %vm482_vm12, %v914_v14, %v913_v57  ;;  %v968_v34 = vmul.f32 2.0, %v2178_v11  ;;  %v960_v11 = vpop.permute.xlu1 %959 }
 0x128   : > { %v919_v31 = vsub.f32 %v911_v27, %v915_v28  ;;  %v958_v35 = vsel %vm446_vm8, %v956_v25, 0.0  ;;  %v610_v38 = vmul.f32 %v2435_v26, %v2402_v39  ;;  %1741 = vrsqrt.f32 %v2433_v61 }
 0x129   : > { %v918_v40 = vsel %vm486_vm13, %v916_v15, 0.0  ;;  %v921_v41 = vmul.f32 %v905_v24, %v905_v24  ;;  %v2460_v42 = vmul.f32 0.5, %v527_v19  ;;  %v723_v43 = vmul.f32 %v2412_v48, %v722_v23 }
 0x12a   : > { %v920_v45 = vsub.f32 %v909_v10, %v918_v40  ;;  %v922_v49 = vmul.f32 %v906_v16, %v906_v16  ;;  %v599_v50 = vmul.f32 %v2426_v18, %v598_v60  ;;  %v967_v52 = vmul.f32 2.0, %v2190_v17 }
 0x12b   : > { %v923_v5 = vmul.f32 %v919_v31, %v919_v31  ;;  %v964_v53 = vsel %vm453_vm9, %v962_v36, 0.0  ;;  %v2467_v4 = vpop.eup %1739  ;;  %v517_v54 = vsub.f32 1.5, %v516_v21  ;;  %v957_v55 = vsel %vm446_vm8, %v954_v47, 0.0 }
 0x12c   : > { %v924_v62 = vmul.f32 %v920_v45, %v920_v45  ;;  %v970_v8 = vadd.f32 %v968_v34, %v958_v35  ;;  %v735_v12 = vmul.f32 %v2422_v13, %v734_v56  ;;  %v611_v63 = vmul.f32 %v2435_v26, %v610_v38 }
 0x12d   : > { %v925_v44 = vadd.f32 %v923_v5, %v921_v41  ;;  %v963_v17 = vsel %vm453_vm9, %v960_v11, 0.0  ;;  %v523_v1 = vand.u32 2147483648, %v2295_v22  ;;  %v2476_v2 = vmul.f32 0.5, %v723_v43 }
 0x12e   : > { %v926_v3 = vadd.f32 %v924_v62, %v922_v49  ;;  %v966_v14 = vsub.f32 %v958_v35, %v964_v53  ;;  %v2478_v7 = vpop.eup %1741  ;;  %v600_v46 = vmul.f32 0.5, %v599_v50  ;;  %v806_v47 = vmul.f32 %v2467_v4, %v2410_v58 }
 0x12f   : > { %v969_v57 = vadd.f32 %v967_v52, %v957_v55  ;;  %v2482_v19 = vadd.f32 1e-06, %v925_v44  ;;  %v529_v20 = vsub.f32 1.5, %v2460_v42  ;;  %v972_v33 = vadd.f32 %v970_v8, %v964_v53 }
 0x130   : > { %v2485_v21 = vadd.f32 1e-06, %v926_v3  ;;  %v965_v23 = vsub.f32 %v957_v55, %v963_v17  ;;  %v518_v24 = vmul.f32 %v2330_v6, %v517_v54  ;;  %v2488_v25 = vmul.f32 0.5, %v735_v12 }
 0x131   : > { %v612_v56 = vmul.f32 0.5, %v611_v63  ;;  %v971_v16 = vadd.f32 %v969_v57, %v963_v17  ;;  %v725_v37 = vsub.f32 1.5, %v2476_v2  ;;  %v818_v60 = vmul.f32 %v2478_v7, %v2433_v61 }
 0x132   : > { %1743 = vrsqrt.f32 %v2482_v19  ;;  %v974_v10 = vrot.slane %v966_v14, 7  ;;  %v601_v27 = vsub.f32 1.5, %v600_v46  ;;  %v807_v28 = vmul.f32 %v2467_v4, %v806_v47 }
 0x133   : > { %v980_v15 = vmul.f32 2.0, %v966_v14  ;;  %v984_v31 = vrot.slane %v966_v14, 1  ;;  %1745 = vrsqrt.f32 %v2485_v21  ;;  %v992_v6 = vrot.slane %v972_v33, 7 }
 0x134   : > { %v973_v34 = vrot.slane %v965_v23, 7  ;;  %v983_v35 = vrot.slane %v965_v23, 1  ;;  %v613_v36 = vsub.f32 1.5, %v612_v56  ;;  %v998_v38 = vrot.slane %v972_v33, 1 }
 0x135   : > { %v991_v40 = vrot.slane %v971_v16, 7  ;;  %v997_v41 = vrot.slane %v971_v16, 1  ;;  %v819_v42 = vmul.f32 %v2478_v7, %v818_v60  ;;  %v979_v49 = vmul.f32 2.0, %v965_v23 }
 0x136   : > { %v975_v43 = vsel %vm468_vm10, %v973_v34, %v974_v10  ;;  %v976_v45 = vsel %vm468_vm10, %v974_v10, %v973_v34  ;;  %v808_v11 = vmul.f32 0.5, %v807_v28  ;;  %v986_v5 = vsel %vm482_vm12, %v984_v31, %v983_v35 }
 0x137   : > { %v977_v50 = vsel %vm472_vm11, %v976_v45, 0.0  ;;  %v982_v52 = vadd.f32 %v980_v15, %v975_v43  ;;  %v985_v55 = vsel %vm482_vm12, %v983_v35, %v984_v31  ;;  %v988_v62 = vsel %vm486_vm13, %v986_v5, 0.0 }
 0x138   : > { %v2505_v53 = vpop.eup %1743  ;;  %v981_v54 = vadd.f32 %v979_v49, %v977_v50  ;;  %v994_v8 = vsel %vm468_vm10, %v992_v6, %v991_v40  ;;  %v993_v63 = vsel %vm468_vm10, %v991_v40, %v992_v6  ;;  %v999_v17 = vsel %vm482_vm12, %v997_v41, %v998_v38 }
 0x139   : > { %v990_v12 = vadd.f32 %v988_v62, %v982_v52  ;;  %v995_v44 = vsel %vm472_vm11, %v994_v8, 0.0  ;;  %v2520_v2 = vpop.eup %1745  ;;  %v602_v3 = vmul.f32 %v2426_v18, %v601_v27  ;;  %v1000_v46 = vsel %vm482_vm12, %v998_v38, %v997_v41 }
 0x13a   : > { %v989_v14 = vadd.f32 %v985_v55, %v981_v54  ;;  %v1003_v47 = vsub.f32 %v995_v44, %v999_v17  ;;  %v809_v57 = vsub.f32 1.5, %v808_v11  ;;  %v820_v33 = vmul.f32 0.5, %v819_v42 }
 0x13b   : > { %v930_v23 = vmul.f32 %v2505_v53, %v2482_v19  ;;  %v1002_v56 = vsel %vm486_vm13, %v1000_v46, 0.0  ;;  %v1006_v18 = vmul.f32 %v990_v12, %v990_v12  ;;  %v530_v51 = vmul.f32 %v2365_v0, %v529_v20 }
 0x13c   : > { %v1004_v16 = vsub.f32 %v993_v63, %v1002_v56  ;;  %v1005_v60 = vmul.f32 %v989_v14, %v989_v14  ;;  %v1007_v10 = vmul.f32 %v1003_v47, %v1003_v47  ;;  %v535_v27 = vand.u32 2147483648, %v2313_v32 }
 0x13d   : > { %v737_v28 = vsub.f32 1.5, %v2488_v25  ;;  %v942_v15 = vmul.f32 %v2520_v2, %v2485_v21  ;;  %vm728_vm1 = vcmp.eq.f32.partialorder %v2387_v9, inf  ;;  %v603_v31 = vmul.f32 %v602_v3, %v2397_v30 }
 0x13e   : > { %v614_v59 = vmul.f32 %v2435_v26, %v613_v36  ;;  %v1008_v6 = vmul.f32 %v1004_v16, %v1004_v16  ;;  %v1009_v34 = vadd.f32 %v1007_v10, %v1005_v60  ;;  %v519_v35 = vmul.f32 %v518_v24, %v2295_v22 }
 0x13f   : > { %v726_v0 = vmul.f32 %v2412_v48, %v725_v37  ;;  %v731_v20 = vand.u32 2147483648, %v2387_v9  ;;  %v931_v25 = vmul.f32 %v2505_v53, %v930_v23  ;;  %v810_v38 = vmul.f32 %v2467_v4, %v809_v57 }
 0x140   : > { %v821_v40 = vsub.f32 1.5, %v820_v33  ;;  %v1010_v41 = vadd.f32 %v1008_v6, %v1006_v18  ;;  %v2545_v42 = vadd.f32 1e-06, %v1009_v34  ;;  %v531_v26 = vmul.f32 %v530_v51, %v2313_v32 }
 0x141   : > { %v738_v36 = vmul.f32 %v2422_v13, %v737_v28  ;;  %vm604_vm3 = vcmp.eq.f32.partialorder %v2397_v30, inf  ;;  %v943_v24 = vmul.f32 %v2520_v2, %v942_v15  ;;  %v615_v37 = vmul.f32 %v614_v59, %v2402_v39  ;;  %v623_v28 = vld [vmem:[#allocation5 + $0x8] sm:$0xff] }
 0x142   : > { %v605_v48 = vsel %vm604_vm3, %v2397_v30, %v603_v31  ;;  %v2553_v43 = vadd.f32 1e-06, %v1010_v41  ;;  %1747 = vrsqrt.f32 %v2545_v42  ;;  %v521_v4 = vsel %vm520_vm14, %v2295_v22, %v519_v35 }
 0x143   : > { %v727_v45 = vmul.f32 %v726_v0, %v2387_v9  ;;  %vm730_vm4 = vcmp.eq.f32.partialorder %v2387_v9, 0.0  ;;  %v607_v13 = vand.u32 2147483648, %v2397_v30  ;;  %v932_v49 = vmul.f32 0.5, %v931_v25 }
 0x144   : > { %vm606_vm5 = vcmp.eq.f32.partialorder %v2397_v30, 0.0  ;;  %v811_v11 = vmul.f32 %v810_v38, %v2410_v58  ;;  %v822_v50 = vmul.f32 %v2478_v7, %v821_v40  ;;  %1749 = vrsqrt.f32 %v2553_v43 }
 0x145   : > { %vm740_vm6 = vcmp.eq.f32.partialorder %v2395_v29, inf  ;;  %v608_v52 = vsel %vm606_vm5, %v607_v13, %v605_v48  ;;  %vm616_vm7 = vcmp.eq.f32.partialorder %v2402_v39, inf  ;;  %v944_v5 = vmul.f32 0.5, %v943_v24 }
 0x146   : > { %v524_v54 = vsel %vm522_vm15, %v523_v1, %v521_v4  ;;  %v533_v30 = vsel %vm532_vm0, %v2313_v32, %v531_v26  ;;  %v739_v55 = vmul.f32 %v738_v36, %v2395_v29  ;;  %v617_v7 = vsel %vm616_vm7, %v2402_v39, %v615_v37 }
 0x147   : > { %v729_v62 = vsel %vm728_vm1, %v2387_v9, %v727_v45  ;;  %v619_v8 = vand.u32 2147483648, %v2402_v39  ;;  %vm812_vm8 = vcmp.eq.f32.partialorder %v2410_v58, inf  ;;  %v933_v12 = vsub.f32 1.5, %v932_v49  ;;  %v624_v45 = vld [vmem:[#allocation5] sm:$0xff] }
 0x148   : > { %v1748_v63 = vpop.eup %1747  ;;  %vm618_vm9 = vcmp.eq.f32.partialorder %v2402_v39, 0.0  ;;  %v621_v22 = vsub.f32 %v524_v54, %v608_v52  ;;  %v813_v1 = vsel %vm812_vm8, %v2410_v58, %v811_v11  ;;  %v823_v44 = vmul.f32 %v822_v50, %v2433_v61 }
 0x149   : > { %v620_v17 = vsel %vm618_vm9, %v619_v8, %v617_v7  ;;  %v815_v3 = vand.u32 2147483648, %v2410_v58  ;;  %v945_v14 = vsub.f32 1.5, %v944_v5  ;;  %v1014_v46 = vmul.f32 %v1748_v63, %v2545_v42 }
 0x14a   : > { %v1750_v47 = vpop.eup %1749  ;;  %v741_v57 = vsel %vm740_vm6, %v2395_v29, %v739_v55  ;;  %v536_v33 = vsel %vm534_vm2, %v535_v27, %v533_v30  ;;  %vm814_vm10 = vcmp.eq.f32.partialorder %v2410_v58, 0.0  ;;  %vm824_vm11 = vcmp.eq.f32.partialorder %v2433_v61, inf }
 0x14b   : > { %v816_v39 = vsel %vm814_vm10, %v815_v3, %v813_v1  ;;  %v934_v23 = vmul.f32 %v2505_v53, %v933_v12  ;;  %v1015_v56 = vmul.f32 %v1748_v63, %v1014_v46  ;;  %v1026_v16 = vmul.f32 %v1750_v47, %v2553_v43 }
 0x14c   : > { %v622_v60 = vsub.f32 %v536_v33, %v620_v17  ;;  %v625_v18 = vmul.f32 %v621_v22, %v621_v22  ;;  %v732_v10 = vsel %vm730_vm4, %v731_v20, %v729_v62  ;;  %v825_v51 = vsel %vm824_vm11, %v2433_v61, %v823_v44 }
 0x14d   : > { %v827_v32 = vand.u32 2147483648, %v2433_v61  ;;  %v946_v58 = vmul.f32 %v2520_v2, %v945_v14  ;;  %v1016_v27 = vmul.f32 0.5, %v1015_v56  ;;  %v1027_v15 = vmul.f32 %v1750_v47, %v1026_v16 }
 0x14e   : > { %vm742_vm12 = vcmp.eq.f32.partialorder %v2395_v29, 0.0  ;;  %v743_v53 = vand.u32 2147483648, %v2395_v29  ;;  %vm826_vm13 = vcmp.eq.f32.partialorder %v2433_v61, 0.0  ;;  %v829_v31 = vsub.f32 %v732_v10, %v816_v39 }
 0x14f   : > { %v828_v59 = vsel %vm826_vm13, %v827_v32, %v825_v51  ;;  %v935_v9 = vmul.f32 %v934_v23, %v2482_v19  ;;  %v1017_v6 = vsub.f32 1.5, %v1016_v27  ;;  %v1028_v34 = vmul.f32 0.5, %v1027_v15 }
 0x150   : > { %v626_v35 = vmul.f32 %v622_v60, %v622_v60  ;;  %v627_v0 = vadd.f32 %v625_v18, %v623_v28  ;;  %v744_v20 = vsel %vm742_vm12, %v743_v53, %v741_v57  ;;  %vm936_vm14 = vcmp.eq.f32.partialorder %v2482_v19, inf }
 0x151   : > { %v947_v2 = vmul.f32 %v946_v58, %v2485_v21  ;;  %v1018_v25 = vmul.f32 %v1748_v63, %v1017_v6  ;;  %v1029_v38 = vsub.f32 1.5, %v1028_v34  ;;  %v830_v40 = vsub.f32 %v744_v20, %v828_v59 }
 0x152   : > { %v833_v41 = vmul.f32 %v829_v31, %v829_v31  ;;  %vm938_vm15 = vcmp.eq.f32.partialorder %v2482_v19, 0.0  ;;  %v939_v29 = vand.u32 2147483648, %v2482_v19  ;;  %v937_v61 = vsel %vm936_vm14, %v2482_v19, %v935_v9 }
 0x153   : > { %vm948_vm0 = vcmp.eq.f32.partialorder %v2485_v21, inf  ;;  %v1019_v26 = vmul.f32 %v1018_v25, %v2545_v42  ;;  %v1030_v36 = vmul.f32 %v1750_v47, %v1029_v38  ;;  %vm950_vm1 = vcmp.eq.f32.partialorder %v2485_v21, 0.0 }
 0x154   : > { %v951_v24 = vand.u32 2147483648, %v2485_v21  ;;  %vm1020_vm2 = vcmp.eq.f32.partialorder %v2545_v42, inf  ;;  %v1023_v48 = vand.u32 2147483648, %v2545_v42  ;;  %v949_v37 = vsel %vm948_vm0, %v2485_v21, %v947_v2 }
 0x155   : > { %v1021_v4 = vsel %vm1020_vm2, %v2545_v42, %v1019_v26  ;;  %vm1022_vm3 = vcmp.eq.f32.partialorder %v2545_v42, 0.0  ;;  %v1031_v19 = vmul.f32 %v1030_v36, %v2553_v43  ;;  %v940_v13 = vsel %vm938_vm15, %v939_v29, %v937_v61 }
 0x156   : > { %v1024_v49 = vsel %vm1022_vm3, %v1023_v48, %v1021_v4  ;;  %vm1032_vm4 = vcmp.eq.f32.partialorder %v2553_v43, inf  ;;  %v1035_v11 = vand.u32 2147483648, %v2553_v43  ;;  %v834_v50 = vmul.f32 %v830_v40, %v830_v40 }
 0x157   : > { %v1033_v52 = vsel %vm1032_vm4, %v2553_v43, %v1031_v19  ;;  %vm1034_vm5 = vcmp.eq.f32.partialorder %v2553_v43, 0.0  ;;  %v1037_v5 = vsub.f32 %v940_v13, %v1024_v49  ;;  %v952_v54 = vsel %vm950_vm1, %v951_v24, %v949_v37 }
 0x158   : > { %v1036_v30 = vsel %vm1034_vm5, %v1035_v11, %v1033_v52  ;;  %v628_v42 = vadd.f32 %v626_v35, %v624_v45  ;;  %v835_v55 = vadd.f32 %v833_v41, %v627_v0 }
 0x159   : > { %v1038_v7 = vsub.f32 %v952_v54, %v1036_v30  ;;  %v1041_v62 = vmul.f32 %v1037_v5, %v1037_v5 }
 0x15a   : > { %v836_v8 = vadd.f32 %v834_v50, %v628_v42 }
 0x15b   : > { %v1042_v12 = vmul.f32 %v1038_v7, %v1038_v7  ;;  %v1043_v63 = vadd.f32 %v1041_v62, %v835_v55  ;;  %1050 = sbr.rel (%p1509_p7) target bundleno = 861 (0x35d), region = 44 }
 0x15d   : > { %v1044_v22 = vadd.f32 %v1042_v12, %v836_v8  ;;  %1045 = vst [vmem:[#allocation5 + $0x8] sm:$0xff] %v1043_v63 }
 0x15f   : > { %1046 = vst [vmem:[#allocation5] sm:$0xff] %v1044_v22 }
 0x160   : > { %v1051_v1 = vld [vmem:[#allocation2 + $0x30] sm:$0xff]  ;;  %v1052_v43 = vld [vmem:[#allocation2] sm:$0xff]  ;;  %v1075_v44 = vld [vmem:[#allocation4 + $0x28] sm:$0xff] }
 0x161   : > { %v1053_v17 = vadd.f32 %v1052_v43, %v1051_v1  ;;  %v1076_v21 = vld [vmem:[#allocation4 + $0x20] sm:$0xff]  ;;  %v1125_v14 = vld [vmem:[#allocation3 + $0x10] sm:$0xff]  ;;  %v1064_v33 = vld [vmem:[#allocation3 + $0x18] sm:$0xff] }
 0x162   : > { %v1077_v3 = vadd.f32 %v1076_v21, %v1075_v44  ;;  %v1126_v46 = vld [vmem:[#allocation3 + $0x20] sm:$0xff]  ;;  %v1113_v39 = vld [vmem:[#allocation2 + $0x18] sm:$0xff]  ;;  %v1114_v23 = vld [vmem:[#allocation2 + $0x10] sm:$0xff] }
 0x163   : > { %1054 = vadd.xlane.f32.xlu0 %v1053_v17  ;;  %v1127_v47 = vadd.f32 %v1126_v46, %v1125_v14  ;;  %v1063_v57 = vld [vmem:[#allocation3] sm:$0xff]  ;;  %v1137_v56 = vld [vmem:[#allocation4 + $0x38] sm:$0xff]  ;;  %v1138_v16 = vld [vmem:[#allocation4 + $0x10] sm:$0xff]  ;;  %v1115_v18 = vadd.f32 %v1114_v23, %v1113_v39 }
 0x164   : > { %1078 = vadd.xlane.f32.xlu1 %v1077_v3  ;;  %v1065_v60 = vadd.f32 %v1064_v33, %v1063_v57  ;;  %v1139_v10 = vadd.f32 %v1138_v16, %v1137_v56  ;;  %v1187_v51 = vld [vmem:[#allocation3 + $0x28] sm:$0xff]  ;;  %v1176_v27 = vld [vmem:[#allocation2 + $0x20] sm:$0xff]  ;;  %v1200_v53 = vld [vmem:[#allocation4 + $0x30] sm:$0xff] }
 0x165   : > { %1128 = vadd.xlane.f32.xlu2 %v1127_v47  ;;  %v1188_v28 = vld [vmem:[#allocation3 + $0x8] sm:$0xff]  ;;  %v1249_v49 = vld [vmem:[#allocation3 + $0x30] sm:$0xff]  ;;  %v1250_v11 = vld [vmem:[#allocation3 + $0x38] sm:$0xff] }
 0x166   : > { %v1175_v32 = vld [vmem:[#allocation2 + $0x8] sm:$0xff]  ;;  %v1189_v58 = vadd.f32 %v1188_v28, %v1187_v51  ;;  %v1251_v52 = vadd.f32 %v1250_v11, %v1249_v49  ;;  %v1238_v5 = vld [vmem:[#allocation2 + $0x38] sm:$0xff]  ;;  %v1262_v30 = vld [vmem:[#allocation4] sm:$0xff] }
 0x167   : > { %v1199_v15 = vld [vmem:[#allocation4 + $0x8] sm:$0xff]  ;;  %v1177_v31 = vadd.f32 %v1176_v27, %v1175_v32  ;;  %v1261_v54 = vld [vmem:[#allocation4 + $0x18] sm:$0xff] }
 0x168   : > { %v1201_v59 = vadd.f32 %v1200_v53, %v1199_v15  ;;  %v1237_v50 = vld [vmem:[#allocation2 + $0x28] sm:$0xff]  ;;  %v1263_v55 = vadd.f32 %v1262_v30, %v1261_v54 }
 0x169   : > { %v1239_v42 = vadd.f32 %v1238_v5, %v1237_v50 }
 0x16b   : > { %1066 = vadd.xlane.f32.xlu0 %v1065_v60 }
 0x16c   : > { %1116 = vadd.xlane.f32.xlu1 %v1115_v18 }
 0x16d   : > { %1140 = vadd.xlane.f32.xlu2 %v1139_v10 }
 0x173   : > { %1178 = vadd.xlane.f32.xlu0 %v1177_v31  ;;  %v1308_v31 = vld [vmem:[#allocation5 + $0x8] sm:$0xff] }
 0x174   : > { %1190 = vadd.xlane.f32.xlu1 %v1189_v58 }
 0x175   : > { %1202 = vadd.xlane.f32.xlu2 %v1201_v59  ;;  %v1309_v59 = vld [vmem:[#allocation5] sm:$0xff] }
 0x17b   : > { %1240 = vadd.xlane.f32.xlu0 %v1239_v42 }
 0x17c   : > { %1252 = vadd.xlane.f32.xlu1 %v1251_v52 }
 0x17d   : > { %1264 = vadd.xlane.f32.xlu2 %v1263_v55 }
 0x1d6   : > { %v1055_v9 = vpop.xlane.xlu0 %1054 }
 0x1d7   : > { %v1056_v6 = vrot.slane %v1055_v9, 4  ;;  %v1079_v34 = vpop.xlane.xlu1 %1078 }
 0x1d8   : > { %v1080_v35 = vrot.slane %v1079_v34, 4  ;;  %v1129_v13 = vpop.xlane.xlu2 %1128 }
 0x1d9   : > { %v1057_v0 = vadd.f32 %v1056_v6, %v1055_v9  ;;  %v1130_v12 = vrot.slane %v1129_v13, 4  ;;  %v1310_v9 = vadd.f32 %v1309_v59, %v1308_v31 }
 0x1da   : > { %v1081_v20 = vadd.f32 %v1080_v35, %v1079_v34 }
 0x1db   : > { %v1058_v2 = vrot.slane %v1057_v0, 2  ;;  %v1131_v43 = vadd.f32 %v1130_v12, %v1129_v13  ;;  %1311 = vadd.xlane.f32.xlu0 %v1310_v9 }
 0x1dc   : > { %v1082_v38 = vrot.slane %v1081_v20, 2 }
 0x1dd   : > { %v1059_v25 = vadd.f32 %v1058_v2, %v1057_v0  ;;  %v1132_v21 = vrot.slane %v1131_v43, 2 }
 0x1de   : > { %v1067_v40 = vpop.xlane.xlu0 %1066  ;;  %v1083_v36 = vadd.f32 %v1082_v38, %v1081_v20 }
 0x1df   : > { %v1068_v41 = vrot.slane %v1067_v40, 4  ;;  %v1060_v29 = vrot.slane %v1059_v25, 1  ;;  %v1117_v7 = vpop.xlane.xlu1 %1116  ;;  %v1133_v33 = vadd.f32 %v1132_v21, %v1131_v43 }
 0x1e0   : > { %v1084_v37 = vrot.slane %v1083_v36, 1  ;;  %v1141_v62 = vpop.xlane.xlu2 %1140  ;;  %v1118_v8 = vrot.slane %v1117_v7, 4 }
 0x1e1   : > { %v1069_v61 = vadd.f32 %v1068_v41, %v1067_v40  ;;  %v1061_v26 = vadd.f32 %v1060_v29, %v1059_v25  ;;  %v1142_v63 = vrot.slane %v1141_v62, 4  ;;  %v1134_v10 = vrot.slane %v1133_v33, 1 }
 0x1e2   : > { %v1085_v45 = vadd.f32 %v1084_v37, %v1083_v36  ;;  %v1119_v1 = vadd.f32 %v1118_v8, %v1117_v7 }
 0x1e3   : > { %v1070_v24 = vrot.slane %v1069_v61, 2  ;;  %1560 = vpush %v1061_v26  ;;  %v1143_v44 = vadd.f32 %v1142_v63, %v1141_v62  ;;  %v1135_v15 = vadd.f32 %v1134_v10, %v1133_v33 }
 0x1e4   : > { %v1120_v17 = vrot.slane %v1119_v1, 2 }
 0x1e5   : > { %v1071_v48 = vadd.f32 %v1070_v24, %v1069_v61  ;;  %v1144_v14 = vrot.slane %v1143_v44, 2 }
 0x1e6   : > { %v1121_v47 = vadd.f32 %v1120_v17, %v1119_v1  ;;  %v1179_v6 = vpop.xlane.xlu0 %1178 }
 0x1e7   : > { %v1072_v4 = vrot.slane %v1071_v48, 1  ;;  %v1145_v23 = vadd.f32 %v1144_v14, %v1143_v44  ;;  %v1191_v34 = vpop.xlane.xlu1 %1190  ;;  %v1180_v0 = vrot.slane %v1179_v6, 4 }
 0x1e8   : > { %v1122_v60 = vrot.slane %v1121_v47, 1  ;;  %v1203_v35 = vpop.xlane.xlu2 %1202  ;;  %v1192_v20 = vrot.slane %v1191_v34, 4 }
 0x1e9   : > { %v1073_v19 = vadd.f32 %v1072_v4, %v1071_v48  ;;  %v1146_v28 = vrot.slane %v1145_v23, 1  ;;  %v1204_v2 = vrot.slane %v1203_v35, 4  ;;  %v1181_v38 = vadd.f32 %v1180_v0, %v1179_v6 }
 0x1ea   : > { %v1123_v27 = vadd.f32 %v1122_v60, %v1121_v47  ;;  %v1193_v40 = vadd.f32 %v1192_v20, %v1191_v34  ;;  %v1936_v6 = vmov 4.0  }
 0x1eb   : > { %1562 = vpush %v1073_v19  ;;  %v1147_v53 = vadd.f32 %v1146_v28, %v1145_v23  ;;  %v1205_v41 = vadd.f32 %v1204_v2, %v1203_v35  ;;  %v1182_v29 = vrot.slane %v1181_v38, 2  ;;  %v1937_v35 = vmov 4096.0  }
 0x1ec   : > { %1564 = vpush %v1085_v45  ;;  %v1194_v61 = vrot.slane %v1193_v40, 2 }
 0x1ed   : > { %v1206_v36 = vrot.slane %v1205_v41, 2  ;;  %v1183_v48 = vadd.f32 %v1182_v29, %v1181_v38 }
 0x1ee   : > { %v1195_v4 = vadd.f32 %v1194_v61, %v1193_v40  ;;  %v1241_v8 = vpop.xlane.xlu0 %1240 }
 0x1ef   : > { %v1207_v45 = vadd.f32 %v1206_v36, %v1205_v41  ;;  %v1184_v11 = vrot.slane %v1183_v48, 1  ;;  %v1253_v12 = vpop.xlane.xlu1 %1252 }
 0x1f0   : > { %v1196_v52 = vrot.slane %v1195_v4, 1  ;;  %v1265_v63 = vpop.xlane.xlu2 %1264  ;;  %v1254_v1 = vrot.slane %v1253_v12, 4 }
 0x1f1   : > { %v1208_v54 = vrot.slane %v1207_v45, 1  ;;  %v1185_v55 = vadd.f32 %v1184_v11, %v1183_v48  ;;  %v1266_v43 = vrot.slane %v1265_v63, 4 }
 0x1f2   : > { %v1197_v7 = vadd.f32 %v1196_v52, %v1195_v4  ;;  %v1255_v21 = vadd.f32 %v1254_v1, %v1253_v12 }
 0x1f3   : > { %v1209_v62 = vadd.f32 %v1208_v54, %v1207_v45 }
 0x214   : > { %s1561_s7 = spop %1560 }
 0x21c   : > { %s1563_s8 = spop %1562 }
 0x21d   : > { %s1089_s16 = sadd.f32 %s1563_s8, %s1561_s7  ;;  %s2627_s17 = spop %1564 }
 0x21e   : > { %s1087_s11 = smul.f32 2.0, %s2627_s17 }
 0x21f   : > { %s1090_s24 = sadd.f32 %s2627_s17, %s1089_s16 }
 0x220   : > { %s1088_s21 = sadd.f32 1e-06, %s1087_s11 }
 0x221   : > { %s1091_s25 = sadd.f32 1e-06, %s1090_s24 }
 0x223   : > { %v1092_v22 = vstv %s1091_s25 }
 0x224   : > { %1751 = vrcp.f32 %v1092_v22  ;;  %v1104_v39 = vand.u32 2147483648, %v1092_v22  ;;  %v1102_v16 = vand.u32 2147483647, %v1092_v22  ;;  %vm1098_vm7 = vweird.f32 %v1092_v22 }
 0x226   : > { %v1105_v51 = vor.u32 1.1754944e-38, %v1104_v39  ;;  %vm1103_vm9 = vcmp.eq.f32.partialorder %v1102_v16, 8.507059e+37 }
 0x22a   : > { %v1752_v3 = vpop.eup %1751 }
 0x22b   : > { %v1094_v46 = vmul.f32 %v1752_v3, %v1092_v22  ;;  %vm1099_vm6 = vweird.f32 %v1752_v3  ;;  %v1242_v22 = vrot.slane %v1241_v8, 4 }
 0x22c   : > { %vm1100_vm8 = vmor %vm1098_vm7, %vm1099_vm6 }
 0x22d   : > { %v1095_v57 = vsub.f32 1.0, %v1094_v46  ;;  %v1243_v17 = vadd.f32 %v1242_v22, %v1241_v8  ;;  %v1256_v46 = vrot.slane %v1255_v21, 2 }
 0x22f   : > { %v1096_v56 = vmul.f32 %v1752_v3, %v1095_v57  ;;  %v1244_v14 = vrot.slane %v1243_v17, 2 }
 0x231   : > { %v1097_v18 = vadd.f32 %v1752_v3, %v1096_v56  ;;  %v1245_v39 = vadd.f32 %v1244_v14, %v1243_v17  ;;  %v1257_v56 = vadd.f32 %v1256_v46, %v1255_v21 }
 0x233   : > { %v1101_v32 = vsel %vm1100_vm8, %v1752_v3, %v1097_v18  ;;  %v1267_v3 = vadd.f32 %v1266_v43, %v1265_v63 }
 0x234   : > { %v1106_v58 = vsel %vm1103_vm9, %v1105_v51, %v1101_v32  ;;  %v1246_v51 = vrot.slane %v1245_v39, 1  ;;  %v1258_v32 = vrot.slane %v1257_v56, 1 }
 0x235   : > { %1566 = vpush %v1106_v58  ;;  %v1268_v57 = vrot.slane %v1267_v3, 2 }
 0x236   : > { %1568 = vpush %v1123_v27  ;;  %v1247_v31 = vadd.f32 %v1246_v51, %v1245_v39  ;;  %v1259_v59 = vadd.f32 %v1258_v32, %v1257_v56 }
 0x237   : > { %1570 = vpush %v1135_v15  ;;  %v1269_v16 = vadd.f32 %v1268_v57, %v1267_v3 }
 0x238   : > { %1572 = vpush %v1147_v53 }
 0x239   : > { %v1270_v27 = vrot.slane %v1269_v16, 1 }
 0x23b   : > { %v1271_v9 = vadd.f32 %v1270_v27, %v1269_v16 }
 0x24e   : > { %v1312_v34 = vpop.xlane.xlu0 %1311 }
 0x24f   : > { %v1313_v20 = vrot.slane %v1312_v34, 4 }
 0x251   : > { %v1314_v40 = vadd.f32 %v1313_v20, %v1312_v34 }
 0x253   : > { %v1315_v61 = vrot.slane %v1314_v40, 2 }
 0x266   : > { %s1567_s6 = spop %1566 }
 0x267   : > { %s1108_s12 = smul.f32 %s1567_s6, %s1088_s21  ;;  %s1569_s14 = spop %1568 }
 0x268   : > { %s1571_s9 = spop %1570 }
 0x269   : > { %s2631_s29 = ssub.f32 1.0, %s1108_s12  ;;  %s2634_s10 = spop %1572 }
 0x26a   : > { %s1151_s30 = sadd.f32 %s1571_s9, %s1569_s14  ;;  %s1149_s27 = smul.f32 2.0, %s2634_s10 }
 0x26b   : > { %1111 = sst [smem:[#allocation11]] %s2631_s29 }
 0x26c   : > { %s1152_s15 = sadd.f32 %s2634_s10, %s1151_s30 }
 0x26d   : > { %s1150_s28 = sadd.f32 1e-06, %s1149_s27 }
 0x26e   : > { %s1153_s18 = sadd.f32 1e-06, %s1152_s15 }
 0x270   : > { %v1154_v25 = vstv %s1153_s18 }
 0x271   : > { %1753 = vrcp.f32 %v1154_v25  ;;  %v1166_v19 = vand.u32 2147483648, %v1154_v25  ;;  %v1164_v49 = vand.u32 2147483647, %v1154_v25  ;;  %vm1160_vm11 = vweird.f32 %v1154_v25 }
 0x273   : > { %v1167_v5 = vor.u32 1.1754944e-38, %v1166_v19  ;;  %vm1165_vm13 = vcmp.eq.f32.partialorder %v1164_v49, 8.507059e+37 }
 0x277   : > { %v1754_v26 = vpop.eup %1753 }
 0x278   : > { %v1156_v24 = vmul.f32 %v1754_v26, %v1154_v25  ;;  %vm1161_vm10 = vweird.f32 %v1754_v26 }
 0x279   : > { %vm1162_vm12 = vmor %vm1160_vm11, %vm1161_vm10 }
 0x27a   : > { %v1157_v37 = vsub.f32 1.0, %v1156_v24 }
 0x27c   : > { %v1158_v13 = vmul.f32 %v1754_v26, %v1157_v37  ;;  %v1316_v37 = vadd.f32 %v1315_v61, %v1314_v40 }
 0x27e   : > { %v1159_v50 = vadd.f32 %v1754_v26, %v1158_v13 }
 0x280   : > { %v1163_v30 = vsel %vm1162_vm12, %v1754_v26, %v1159_v50  ;;  %v1317_v50 = vrot.slane %v1316_v37, 1 }
 0x281   : > { %v1168_v42 = vsel %vm1165_vm13, %v1167_v5, %v1163_v30 }
 0x282   : > { %1574 = vpush %v1168_v42 }
 0x283   : > { %1576 = vpush %v1185_v55  ;;  %v1318_v55 = vadd.f32 %v1317_v50, %v1316_v37 }
 0x284   : > { %1578 = vpush %v1197_v7 }
 0x285   : > { %1580 = vpush %v1209_v62 }
 0x2b3   : > { %s1575_s13 = spop %1574 }
 0x2b4   : > { %s1170_s7 = smul.f32 %s1575_s13, %s1150_s28  ;;  %s1577_s8 = spop %1576 }
 0x2b5   : > { %s1579_s16 = spop %1578 }
 0x2b6   : > { %s2638_s17 = ssub.f32 1.0, %s1170_s7  ;;  %s2641_s25 = spop %1580 }
 0x2b7   : > { %s1213_s24 = sadd.f32 %s1579_s16, %s1577_s8  ;;  %s1211_s6 = smul.f32 2.0, %s2641_s25 }
 0x2b8   : > { %1173 = sst [smem:[#allocation11 + $0x1]] %s2638_s17 }
 0x2b9   : > { %s1214_s11 = sadd.f32 %s2641_s25, %s1213_s24 }
 0x2ba   : > { %s1212_s12 = sadd.f32 1e-06, %s1211_s6 }
 0x2bb   : > { %s1215_s21 = sadd.f32 1e-06, %s1214_s11 }
 0x2bc   : > { %s1174_s10 = sadd.f32 %s2638_s17, %s2631_s29 }
 0x2bd   : > { %v1216_v44 = vstv %s1215_s21 }
 0x2be   : > { %1755 = vrcp.f32 %v1216_v44  ;;  %v1228_v60 = vand.u32 2147483648, %v1216_v44  ;;  %v1226_v10 = vand.u32 2147483647, %v1216_v44  ;;  %vm1222_vm15 = vweird.f32 %v1216_v44 }
 0x2bf   : > { %1757 = vrcp.f32 %v1936_v6 }
 0x2c0   : > { %v1229_v58 = vor.u32 1.1754944e-38, %v1228_v60  ;;  %vm1227_vm1 = vcmp.eq.f32.partialorder %v1226_v10, 8.507059e+37  ;;  %1759 = vrcp.f32 %v1937_v35 }
 0x2c4   : > { %v1756_v47 = vpop.eup %1755 }
 0x2c5   : > { %v1218_v33 = vmul.f32 %v1756_v47, %v1216_v44  ;;  %vm1223_vm14 = vweird.f32 %v1756_v47  ;;  %v1758_v0 = vpop.eup %1757 }
 0x2c6   : > { %vm1224_vm0 = vmor %vm1222_vm15, %vm1223_vm14  ;;  %v1760_v2 = vpop.eup %1759  ;;  %v1300_v25 = vmul.f32 4.0, %v1758_v0  ;;  %vm1304_vm3 = vweird.f32 %v1758_v0 }
 0x2c7   : > { %v1219_v23 = vsub.f32 1.0, %v1218_v33  ;;  %v1321_v41 = vmul.f32 4096.0, %v1760_v2  ;;  %vm1325_vm6 = vweird.f32 %v1760_v2 }
 0x2c8   : > { %v1301_v29 = vsub.f32 1.0, %v1300_v25 }
 0x2c9   : > { %v1220_v18 = vmul.f32 %v1756_v47, %v1219_v23  ;;  %v1322_v26 = vsub.f32 1.0, %v1321_v41 }
 0x2ca   : > { %v1302_v24 = vmul.f32 %v1758_v0, %v1301_v29 }
 0x2cb   : > { %v1221_v28 = vadd.f32 %v1756_v47, %v1220_v18  ;;  %v1323_v19 = vmul.f32 %v1760_v2, %v1322_v26 }
 0x2cc   : > { %v1303_v13 = vadd.f32 %v1758_v0, %v1302_v24 }
 0x2cd   : > { %v1225_v15 = vsel %vm1224_vm0, %v1756_v47, %v1221_v28  ;;  %v1324_v5 = vadd.f32 %v1760_v2, %v1323_v19 }
 0x2ce   : > { %v1230_v53 = vsel %vm1227_vm1, %v1229_v58, %v1225_v15  ;;  %v1305_v42 = vsel %vm1304_vm3, %v1758_v0, %v1303_v13 }
 0x2cf   : > { %1582 = vpush %v1230_v53  ;;  %v1326_v62 = vsel %vm1325_vm6, %v1760_v2, %v1324_v5 }
 0x2d0   : > { %1584 = vpush %v1247_v31 }
 0x2d1   : > { %1586 = vpush %v1259_v59 }
 0x2d2   : > { %1588 = vpush %v1271_v9 }
 0x300   : > { %s1583_s14 = spop %1582 }
 0x301   : > { %s1232_s9 = smul.f32 %s1583_s14, %s1212_s12  ;;  %s1585_s30 = spop %1584 }
 0x302   : > { %s1587_s15 = spop %1586 }
 0x303   : > { %s1233_s18 = ssub.f32 1.0, %s1232_s9  ;;  %s2649_s13 = spop %1588 }
 0x304   : > { %s1275_s27 = sadd.f32 %s1587_s15, %s1585_s30  ;;  %s1273_s29 = smul.f32 2.0, %s2649_s13 }
 0x305   : > { %1235 = sst [smem:[#allocation11 + $0x2]] %s1233_s18 }
 0x306   : > { %s2647_s28 = sadd.f32 %s1233_s18, %s1174_s10 }
 0x307   : > { %s1276_s7 = sadd.f32 %s2649_s13, %s1275_s27 }
 0x308   : > { %s1274_s16 = sadd.f32 1e-06, %s1273_s29 }
 0x309   : > { %s1277_s8 = sadd.f32 1e-06, %s1276_s7 }
 0x30b   : > { %v1278_v38 = vstv %s1277_s8 }
 0x30c   : > { %1761 = vrcp.f32 %v1278_v38  ;;  %v1290_v45 = vand.u32 2147483648, %v1278_v38  ;;  %v1288_v11 = vand.u32 2147483647, %v1278_v38  ;;  %vm1284_vm4 = vweird.f32 %v1278_v38 }
 0x30e   : > { %v1291_v54 = vor.u32 1.1754944e-38, %v1290_v45  ;;  %vm1289_vm7 = vcmp.eq.f32.partialorder %v1288_v11, 8.507059e+37 }
 0x312   : > { %v1762_v36 = vpop.eup %1761 }
 0x313   : > { %v1280_v48 = vmul.f32 %v1762_v36, %v1278_v38  ;;  %vm1285_vm2 = vweird.f32 %v1762_v36 }
 0x314   : > { %vm1286_vm5 = vmor %vm1284_vm4, %vm1285_vm2 }
 0x315   : > { %v1281_v4 = vsub.f32 1.0, %v1280_v48 }
 0x317   : > { %v1282_v49 = vmul.f32 %v1762_v36, %v1281_v4 }
 0x319   : > { %v1283_v52 = vadd.f32 %v1762_v36, %v1282_v49 }
 0x31b   : > { %v1287_v30 = vsel %vm1286_vm5, %v1762_v36, %v1283_v52 }
 0x31c   : > { %v1292_v7 = vsel %vm1289_vm7, %v1291_v54, %v1287_v30 }
 0x31d   : > { %1590 = vpush %v1292_v7 }
 0x31e   : > { %1592 = vpush %v1305_v42 }
 0x31f   : > { %1594 = vpush %v1318_v55 }
 0x320   : > { %1596 = vpush %v1326_v62 }
 0x34e   : > { %s1591_s17 = spop %1590 }
 0x34f   : > { %s1294_s24 = smul.f32 %s1591_s17, %s1274_s16  ;;  %s1593_s25 = spop %1592 }
 0x350   : > { %s1595_s11 = spop %1594 }
 0x351   : > { %s1295_s21 = ssub.f32 1.0, %s1294_s24  ;;  %s1597_s6 = spop %1596 }
 0x352   : > { %s1328_s12 = smul.f32 %s1597_s6, %s1595_s11 }
 0x353   : > { %1297 = sst [smem:[#allocation11 + $0x3]] %s1295_s21 }
 0x354   : > { %s1298_s14 = sadd.f32 %s1295_s21, %s2647_s28  ;;  %s1334_s30 = smul.f32 0.5, %s1328_s12 }
 0x355   : > { %1332 = sst [smem:[#allocation14]] %s1328_s12 }
 0x356   : > { %s1307_s9 = smul.f32 %s1593_s25, %s1298_s14 }
 0x358   : > { %1330 = sst [smem:[#allocation12]] %s1307_s9  ;;  %s1333_s10 = smul.f32 0.5, %s1307_s9 }
 0x35a   : > { %s1335_s15 = sadd.f32 %s1334_s30, %s1333_s10 }
 0x35c   : > { %1337 = sst [smem:[#allocation15]] %s1335_s15 }
 0x35d PF: > { %p1626_p11 = scmp.eq.s32.totalorder %s1991_s22, 1  ;;  %s1354_s13 = sshll.u32 %s2703_s3, 4  ;;  %s1355_s13 = int_to_ptr.hbm [resolvable:$true] %s1354_s13 }
 0x35e   : > { %s1938_s28 = smov [#allocation12]   ;;  %s1344_s29 = sshll.u32 %s2702_s2, 4  ;;  %s1345_s29 = int_to_ptr.hbm [resolvable:$true] %s1344_s29 }
 0x35f   : > { %1605 = dma.smem_to_hbm (%p1626_p11), %s1938_s28, 16, %s1355_s13, [#allocation13]  }
 0x360   : > { %s1364_s24 = sshll.u32 %s2704_s4, 4  ;;  %s1939_s25 = smov [#allocation11]   ;;  %s1365_s24 = int_to_ptr.hbm [resolvable:$true] %s1364_s24 }
 0x361   : > { %1603 = dma.smem_to_hbm (%p1626_p11), %s1939_s25, 16, %s1345_s29, [#allocation8]  }
 0x362   : > { %s1940_s11 = smov [#allocation14]   ;;  %s1374_s12 = sshll.u32 %s2705_s5, 4  ;;  %s1375_s12 = int_to_ptr.hbm [resolvable:$true] %s1374_s12 }
 0x363   : > { %1607 = dma.smem_to_hbm (%p1626_p11), %s1940_s11, 16, %s1365_s24, [#allocation13]  }
 0x364   : > { %s1941_s14 = smov [#allocation15]  }
 0x365   : > { %1609 = dma.smem_to_hbm (%p1626_p11), %s1941_s14, 16, %s1375_s12, [#allocation16]  }
 0x366   : > { %1904 = dma.done.wait (%p1626_p11), [#allocation8], 16  }
 0x367   : > { %1906 = vsyncadd (%p1626_p11), [#allocation8], 4294967280 }
 0x368   : > { %1908 = dma.done.wait (%p1626_p11), [#allocation13], 32  }
 0x369   : > { %1910 = vsyncadd (%p1626_p11), [#allocation13], 4294967264 }
 0x36a   : > { %1912 = dma.done.wait (%p1626_p11), [#allocation16], 16  }
 0x36b   : > { %1914 = vsyncadd (%p1626_p11), [#allocation16], 4294967280 }
 0x36c   : > { %1398 = sfence }
 0x36d PF: > { %p22_p2 = scmp.ge.s32.totalorder %s1994_s23, 4   ;;  %s2712_s18 = smov %s1921_s19 }
 0x36e   : > { %s2713_s19 = smov %s1925_s20  ;;  %s2714_s20 = smov %s2004_s26 }
 0x36f   : > { %s2715_s21 = smov %s1994_s23  ;;  %24 = sbr.rel (!%p22_p2) target bundleno = 8 (0x8), region = 132 }
 0x374   :  { %1404 = vsyncpa [#allocation7], 1 }
 0x375   :  { %1406 = vsyncpa [#allocation7 + $0x1], 1 }
 0x376   :  { %1407 = vsyncpa [#allocation10], 1 }
 0x377   :  { %1409 = vsyncpa [#allocation10 + $0x1], 1 }
 0x378   :  { %1410 = vsyncpa [#allocation8], 1 }
 0x379   :  { %1412 = vsyncpa [#allocation8 + $0x1], 1 }
 0x37a   :  { %1413 = vsyncpa [#allocation13], 1 }
 0x37b   :  { %1414 = vsyncpa [#allocation16], 1 }

</bundles_post_ra>
